<compile_context>
chip_gen: v7x
topology: tpu7x:2x2x1
jax: 0.10.0
libtpu: 0.0.40
codegen_flags: <defaults>
</compile_context>

<pallas_src>
import jax
import jax.numpy as jnp
from jax.experimental import pallas as pl
from jax.experimental.pallas import tpu as pltpu


def _round_up(n: int, m: int) -> int:
    return (n + m - 1) // m * m


def mlp_kernel(x_ref, w1_ref, b1_ref, w2_ref, b2_ref, o_ref):
    # Layer 1 on the MXU: bf16 operands, f32 accumulate.
    h = jnp.dot(x_ref[...], w1_ref[...], preferred_element_type=jnp.float32)  # (TB, Hp)
    # Bias + ReLU in f32 on the VPU (padded hidden columns stay exactly 0).
    h = jnp.maximum(h + b1_ref[...], 0.0)
    # Layer 2 (Hp -> 1): elementwise multiply (VPU) + lane reduce (XLU) instead
    # of a 1-wide MXU matmul; b2 is a scalar read from SMEM.
    z = jnp.sum(h * w2_ref[...], axis=-1, keepdims=True) + b2_ref[0]          # (TB, 1)
    # Sigmoid: exp lands on the EUP. Output column store is tiny (B*4 bytes,
    # D x smaller than the x stream), so a lane-dense output slab is not worth
    # the extra in-kernel relayout here.
    o_ref[...] = 1.0 / (1.0 + jnp.exp(-z))


def mlp_forward(x, w1, b1, w2, b2, *, block_b: int = 512):
    """x: (B, D); w1: (D, H); b1: (H,); w2: (H, 1); b2: (1,). Returns (B, 1) f32."""
    B, D = x.shape
    H = w1.shape[1]
    Hp = _round_up(max(H, 128), 128)  # pad hidden dim to full lane width

    # Hidden-dim padding is exact: padded units have zero weight/bias -> ReLU(0)=0,
    # and zero second-layer weight, so they contribute nothing.
    w1p = jnp.zeros((D, Hp), jnp.bfloat16).at[:, :H].set(w1.astype(jnp.bfloat16))
    b1p = jnp.zeros((1, Hp), jnp.float32).at[:, :H].set(
        jnp.asarray(b1, jnp.float32).reshape(1, H))
    w2p = jnp.zeros((1, Hp), jnp.float32).at[:, :H].set(
        jnp.asarray(w2, jnp.float32).reshape(1, H))
    b2v = jnp.asarray(b2, jnp.float32).reshape((1,))

    # Batch tiling: TB rows per grid step; pad B up to a multiple of TB.
    tb = min(block_b, _round_up(B, 8))
    bp = _round_up(B, tb)
    xp = x.astype(jnp.bfloat16)
    if bp != B:
        xp = jnp.pad(xp, ((0, bp - B), (0, 0)))

    out = pl.pallas_call(
        mlp_kernel,
        out_shape=jax.ShapeDtypeStruct((bp, 1), jnp.float32),
        grid=(bp // tb,),
        in_specs=[
            pl.BlockSpec((tb, D), lambda i: (i, 0)),            # x: streamed per batch tile
            pl.BlockSpec((D, Hp), lambda i: (0, 0)),            # w1: VMEM-resident
            pl.BlockSpec((1, Hp), lambda i: (0, 0)),            # b1: VMEM-resident
            pl.BlockSpec((1, Hp), lambda i: (0, 0)),            # w2 row: VMEM-resident
            pl.BlockSpec(memory_space=pltpu.MemorySpace.SMEM),  # b2: scalar in SMEM
        ],
        out_specs=pl.BlockSpec((tb, 1), lambda i: (i, 0)),
        compiler_params=pltpu.CompilerParams(
            dimension_semantics=("parallel",),
        ),
    )(xp, w1p, b1p, w2p, b2v)
    return out[:B]


def init_params(key, input_shape: int, hidden: int = 64, out: int = 1):
    # torch.nn.Linear default init: U(-1/sqrt(fan_in), 1/sqrt(fan_in)).
    k1, k2, k3, k4 = jax.random.split(key, 4)
    bound1 = 1.0 / float(input_shape) ** 0.5
    bound2 = 1.0 / float(hidden) ** 0.5
    w1 = jax.random.uniform(k1, (input_shape, hidden), jnp.float32, -bound1, bound1)
    b1 = jax.random.uniform(k2, (hidden,), jnp.float32, -bound1, bound1)
    w2 = jax.random.uniform(k3, (hidden, out), jnp.float32, -bound2, bound2)
    b2 = jax.random.uniform(k4, (out,), jnp.float32, -bound2, bound2)
    return w1, b1, w2, b2


if __name__ == "__main__":
    key = jax.random.PRNGKey(0)
    kx, kp = jax.random.split(key)

    # B > TB so the batch grid (2 steps) and tail padding are both exercised.
    B, D = 1000, 128
    x = jax.random.normal(kx, (B, D), jnp.float32)
    w1, b1, w2, b2 = init_params(kp, D)

    out = jax.block_until_ready(mlp_forward(x, w1, b1, w2, b2))

    # Reference in plain JAX with the same bf16 rounding of the streamed operands.
    xb = x.astype(jnp.bfloat16)
    w1b = w1.astype(jnp.bfloat16)
    h_ref = jnp.maximum(
        jnp.dot(xb, w1b, preferred_element_type=jnp.float32) + b1[None, :], 0.0)
    z_ref = jnp.sum(h_ref * w2.reshape(1, -1), axis=-1, keepdims=True) + b2.reshape(1, 1)
    ref = 1.0 / (1.0 + jnp.exp(-z_ref))

    assert out.shape == (B, 1)
    assert jnp.allclose(out, ref, atol=2e-5, rtol=2e-5), float(jnp.max(jnp.abs(out - ref)))

    print("KERNEL_OK")
</pallas_src>

<mosaic_0001>
module attributes {stable_mosaic.version = 11 : i64} {
  func.func @mlp_kernel(%arg0: i32, %arg1: memref<512x128xbf16, #tpu.memory_space<vmem>>, %arg2: memref<128x128xbf16, #tpu.memory_space<vmem>>, %arg3: memref<1x128xf32, #tpu.memory_space<vmem>>, %arg4: memref<1x128xf32, #tpu.memory_space<vmem>>, %arg5: memref<1xf32, #tpu.memory_space<smem>>, %arg6: memref<512x1xf32, #tpu.memory_space<vmem>>) attributes {dimension_semantics = [#tpu.dimension_semantics<parallel>], iteration_bounds = array<i64: 2>, scalar_prefetch = 0 : i64, scratch_operands = 0 : i64, tpu.core_type = #tpu.core_type<tc>, window_params = [{transform_indices = @transform_0, window_bounds = array<i64: 512, 128>}, {pipeline_mode = #tpu.pipeline_mode<synchronous>, transform_indices = @transform_1, window_bounds = array<i64: 128, 128>}, {pipeline_mode = #tpu.pipeline_mode<synchronous>, transform_indices = @transform_2, window_bounds = array<i64: 1, 128>}, {pipeline_mode = #tpu.pipeline_mode<synchronous>, transform_indices = @transform_3, window_bounds = array<i64: 1, 128>}, {transform_indices = @transform_4, window_bounds = array<i64: 1>}, {transform_indices = @transform_5, window_bounds = array<i64: 512, 1>}]} {
    %c0 = arith.constant 0 : index
    %c0_0 = arith.constant 0 : index
    %0 = vector.load %arg1[%c0, %c0_0] : memref<512x128xbf16, #tpu.memory_space<vmem>>, vector<512x128xbf16>
    %c0_1 = arith.constant 0 : index
    %c0_2 = arith.constant 0 : index
    %1 = vector.load %arg2[%c0_1, %c0_2] : memref<128x128xbf16, #tpu.memory_space<vmem>>, vector<128x128xbf16>
    %cst = arith.constant dense<0.000000e+00> : vector<512x128xf32>
    %2 = tpu.matmul %0, %1, %cst {dimension_numbers = #tpu.dot_dimension_numbers<[1], [0], [0], [1], [0, 0, 1, 1], [], []>} : vector<512x128xbf16>, vector<128x128xbf16>, vector<512x128xf32> -> vector<512x128xf32>
    %c0_3 = arith.constant 0 : index
    %c0_4 = arith.constant 0 : index
    %3 = vector.load %arg3[%c0_3, %c0_4] : memref<1x128xf32, #tpu.memory_space<vmem>>, vector<1x128xf32>
    %4 = vector.broadcast %3 : vector<1x128xf32> to vector<512x128xf32>
    %5 = arith.addf %2, %4 : vector<512x128xf32>
    %cst_5 = arith.constant 0.000000e+00 : f32
    %6 = vector.broadcast %cst_5 : f32 to vector<512x128xf32>
    %7 = arith.maximumf %5, %6 : vector<512x128xf32>
    %c0_6 = arith.constant 0 : index
    %c0_7 = arith.constant 0 : index
    %8 = vector.load %arg4[%c0_6, %c0_7] : memref<1x128xf32, #tpu.memory_space<vmem>>, vector<1x128xf32>
    %9 = vector.broadcast %8 : vector<1x128xf32> to vector<512x128xf32>
    %10 = arith.mulf %7, %9 : vector<512x128xf32>
    %cst_8 = arith.constant dense<0.000000e+00> : vector<512xf32>
    %11 = vector.multi_reduction <add>, %10, %cst_8 [1] : vector<512x128xf32> to vector<512xf32>
    %12 = vector.shape_cast %11 : vector<512xf32> to vector<512x1xf32>
    %c0_9 = arith.constant 0 : index
    %13 = memref.load %arg5[%c0_9] : memref<1xf32, #tpu.memory_space<smem>>
    %14 = vector.broadcast %13 : f32 to vector<512x1xf32>
    %15 = arith.addf %12, %14 : vector<512x1xf32>
    %cst_10 = arith.constant 0.000000e+00 : f32
    %16 = vector.broadcast %cst_10 : f32 to vector<512x1xf32>
    %17 = arith.subf %16, %15 : vector<512x1xf32>
    %18 = math.exp %17 : vector<512x1xf32>
    %cst_11 = arith.constant 1.000000e+00 : f32
    %19 = vector.broadcast %cst_11 : f32 to vector<512x1xf32>
    %20 = arith.addf %19, %18 : vector<512x1xf32>
    %cst_12 = arith.constant 1.000000e+00 : f32
    %21 = vector.broadcast %cst_12 : f32 to vector<512x1xf32>
    %22 = arith.divf %21, %20 : vector<512x1xf32>
    %c0_13 = arith.constant 0 : index
    %c0_14 = arith.constant 0 : index
    %23 = vector.load %arg6[%c0_13, %c0_14] : memref<512x1xf32, #tpu.memory_space<vmem>>, vector<512x1xf32>
    tpu.vector_store %arg6[%c0_13, %c0_14], %22 {strides = array<i32>} : memref<512x1xf32, #tpu.memory_space<vmem>>, vector<512x1xf32>,
    return
  }
  func.func @transform_0(%arg0: i32) -> (i32, i32) {
    %c0_i32 = arith.constant 0 : i32
    %c0_i32_0 = arith.constant 0 : i32
    return %arg0, %c0_i32 : i32, i32
  }
  func.func @transform_1(%arg0: i32) -> (i32, i32) {
    %c0_i32 = arith.constant 0 : i32
    %c0_i32_0 = arith.constant 0 : i32
    %c0_i32_1 = arith.constant 0 : i32
    return %c0_i32, %c0_i32_0 : i32, i32
  }
  func.func @transform_2(%arg0: i32) -> (i32, i32) {
    %c0_i32 = arith.constant 0 : i32
    %c0_i32_0 = arith.constant 0 : i32
    %c0_i32_1 = arith.constant 0 : i32
    return %c0_i32, %c0_i32_0 : i32, i32
  }
  func.func @transform_3(%arg0: i32) -> (i32, i32) {
    %c0_i32 = arith.constant 0 : i32
    %c0_i32_0 = arith.constant 0 : i32
    %c0_i32_1 = arith.constant 0 : i32
    return %c0_i32, %c0_i32_0 : i32, i32
  }
  func.func @transform_4(%arg0: i32) -> i32 {
    %c0_i32 = arith.constant 0 : i32
    %c0_i32_0 = arith.constant 0 : i32
    return %c0_i32 : i32
  }
  func.func @transform_5(%arg0: i32) -> (i32, i32) {
    %c0_i32 = arith.constant 0 : i32
    %c0_i32_0 = arith.constant 0 : i32
    return %arg0, %c0_i32 : i32, i32
  }
}

</mosaic_0001>

<bundles_post_ra>
// kernel: tpu_custom_call.1
= control target key start
LH: loop header
LB: loop body
LE: loop exit
PB: predicated region body
PF: predicated region fallthrough
CT: control target
= control target key end

     0   :  { %s3061_s0 = inlined_call_operand.hbm [shape: bf16[1024,128], index: 0, kind: input, shape index: {}]   ;;  %s3062_s1 = inlined_call_operand.hbm [shape: bf16[128,128], index: 1, kind: input, shape index: {}]   ;;  %s3063_s2 = inlined_call_operand.vmem [shape: f32[1,128], index: 2, kind: input, shape index: {}]   ;;  %s3064_s3 = inlined_call_operand.vmem [shape: f32[1,128], index: 3, kind: input, shape index: {}]   ;;  %s3065_s4 = inlined_call_operand.<no memory space> [shape: f32[1], index: 4, kind: input, shape index: {}]   ;;  %s3066_s5 = inlined_call_operand.vmem [shape: f32[1024,1], index: 5, kind: output, shape index: {}]  }
   0x1   :  { %10 = sst [smem:[#allocation2]] %s3065_s4 }
   0x2   :  { %11 = vsyncpa [#allocation4], 0 }
   0x3   :  { %13 = vsyncpa [#allocation4 + $0x1], 0 }
   0x4   :  { %14 = vsyncpa [#allocation6], 0  ;;  %s2412_s20 = smov 0   ;;  %s2414_s21 = smov 0  }
   0x5   :  { %s2416_s22 = smov 0   ;;  %s2418_s23 = smov 0  }
   0x6 LB: > { %s1735_s4 = sadd.s32 4294967295, %s2373_s23   ;;  %p40_p0 = scmp.ne.s32.totalorder %s2365_s21, %s2361_s20  ;;  %s2373_s23 = sphi %s2418_s23, %s3083_s23   ;;  %s2369_s22 = sphi %s2416_s22, %s3082_s22   ;;  %s2365_s21 = sphi %s2414_s21, %s3081_s21   ;;  %s2361_s20 = sphi %s2412_s20, %s3080_s20  }
   0x7   : > { %p2434_p1 = scmp.eq.s32.totalorder %s1735_s4, 0  ;;  %p1737_p2 = scmp.ge.s32.totalorder %s2373_s23, 1 }
   0x8   : > { %p161_p3 = scmp.lt.s32.totalorder %s2373_s23, 3  ;;  %s2375_s27 = smov [#allocation5]  }
   0x9   : > { %s3071_s24 = scalar_select %p2434_p1, 1, 0 }
   0xa   : > { %p2442_p4 = por %p2434_p1, %p40_p0  ;;  %p2446_p5 = pnand %p1737_p2, %p161_p3 }
   0xb   : > { %s173_s28 = sshll.u32 %s2375_s27, 4  ;;  %s2459_s30 = sadd.s32 1, %s2373_s23   ;;  %s174_s28 = int_to_ptr.vmem [resolvable:$true] %s173_s28 }
   0xc   : > { %s3072_s25 = scalar_select %p2442_p4, 1, 0 }
   0xd   : > { %s3073_s26 = scalar_select %p2446_p5, 1, 0 }
   0xe   : > { %p1935_p6 = pneg %p2446_p5  ;;  %s27_s6 = sadd.s32 1, %s2369_s22 }
   0xf   : > { %s24_s7 = ssub.s32 %s2373_s23, %s2459_s30  ;;  %s2277_s10 = scalar_lea.hbm %s3062_s1, 1024 }
  0x10   : > { %p2454_p7 = pnand %p1935_p6, %p2434_p1  ;;  %p2278_p8 = scmp.ne.s32.totalorder %s3062_s1, %s2277_s10 }
  0x11   : > { %p2284_p12 = scmp.lt.u32.totalorder %s2277_s10, %s3062_s1 }
  0x12   : > { %p2279_p9 = pneg %p2454_p7 }
  0x14   : > { %p2280_p10 = pnand %p2279_p9, %p2278_p8 }
  0x16   : > { %p2281_p11 = pneg %p2280_p10 }
  0x18   : > { %p2286_p13 = pnand %p2284_p12, %p2281_p11 }
  0x1a   : > { %2289 = shalt.err (!%p2286_p13)
}
  0x1b   : > { %s2290_s15 = scalar_lea.vmem %s174_s28, 1024  ;;  %p2298_p6 = scmp.lt.s32.totalorder %s174_s28, %s174_s28 }
  0x1c   : > { %p2291_p0 = scmp.ne.s32.totalorder %s174_s28, %s2290_s15  ;;  %p2299_p1 = scmp.lt.s32.totalorder %s2290_s15, %s2290_s15 }
  0x1e   : > { %p2293_p2 = pnand %p2291_p0, %p2279_p9  ;;  %p2300_p4 = por %p2299_p1, %p2298_p6 }
  0x20   : > { %p2294_p3 = pneg %p2293_p2 }
  0x22   : > { %p2301_p5 = pnand %p2300_p4, %p2294_p3 }
  0x24   : > { %2304 = shalt.err (!%p2301_p5)
}
  0x25   : > { %s2376_s16 = smov 64   ;;  %s2377_s17 = smov 4  }
  0x26   : > { %1938 = dma.hbm_to_vmem [thread:$0]  (!%p2454_p7), %s3062_s1, 1024, %s174_s28, [#allocation6], %s2376_s16, %s2376_s16, %s2377_s17  }
  0x27   : > { %p25_p1 = scmp.eq.s32.totalorder %s24_s7, 0  ;;  %p34_p4 = scmp.ne.s32.totalorder %s2369_s22, %s2365_s21 }
  0x28   : > { %p35_p5 = scmp.eq.s32.totalorder %s2373_s23, 0  ;;  %p1944_p8 = scmp.lt.s32.totalorder %s2373_s23, 2 }
  0x29   : > { %s2488_s20 = scalar_select %p25_p1, %s2369_s22, %s27_s6  }
  0x2a   : > { %p36_p9 = por %p35_p5, %p34_p4  ;;  %s196_s27 = sand.u32 1, %s2369_s22  }
  0x2b   : > { %s1740_s8 = sshll.u32 %s196_s27, 8  ;;  %s1792_s9 = sshll.u32 %s2373_s23, 12 }
  0x2c   : > { %s2495_s29 = scalar_lea.hbm %s3061_s0, %s1792_s9  ;;  %s200_s28 = scalar_lea.vmem [#allocation3], %s1740_s8 }
  0x2d   : > { %s207_s7 = sshll.u32 %s200_s28, 4  ;;  %p2499_p7 = pnand %p1944_p8, %p36_p9  ;;  %s2497_s7 = int_to_ptr.vmem [resolvable:$true] %s207_s7 }
  0x2e   : > { %s2503_s12 = scalar_lea.sflag [#allocation4], %s196_s27  ;;  %s2305_s13 = scalar_lea.hbm %s2495_s29, 4096 }
  0x2f   : > { %p2306_p10 = scmp.ne.s32.totalorder %s2495_s29, %s2305_s13  ;;  %p2307_p11 = pneg %p2499_p7 }
  0x30   : > { %s2310_s18 = scalar_lea.hbm %s3061_s0, 8192  ;;  %p2311_p0 = scmp.lt.u32.totalorder %s2495_s29, %s3061_s0 }
  0x31   : > { %p2308_p12 = pnand %p2307_p11, %p2306_p10  ;;  %p2312_p2 = scmp.lt.u32.totalorder %s2310_s18, %s2305_s13 }
  0x32   : > { %p2314_p6 = scmp.lt.u32.totalorder %s2305_s13, %s2495_s29 }
  0x33   : > { %p2309_p13 = pneg %p2308_p12  ;;  %p2313_p3 = por %p2312_p2, %p2311_p0 }
  0x35   : > { %p2315_p1 = por %p2314_p6, %p2313_p3 }
  0x37   : > { %p2316_p4 = pnand %p2315_p1, %p2309_p13 }
  0x39   : > { %2319 = shalt.err (!%p2316_p4)
}
  0x3a   : > { %s2320_s27 = scalar_lea.vmem %s2497_s7, 4096  ;;  %s2378_s9 = smov [#allocation3]  }
  0x3b   : > { %p2321_p5 = scmp.ne.s32.totalorder %s2497_s7, %s2320_s27  ;;  %s2325_s10 = sshll.u32 %s2378_s9, 4  ;;  %s2326_s10 = int_to_ptr.vmem [resolvable:$false] %s2325_s10 }
  0x3c   : > { %s2327_s11 = scalar_lea.vmem %s2326_s10, 8192  ;;  %p2328_p10 = scmp.lt.s32.totalorder %s2497_s7, %s2326_s10 }
  0x3d   : > { %p2323_p8 = pnand %p2321_p5, %p2307_p11  ;;  %p2329_p12 = scmp.lt.s32.totalorder %s2327_s11, %s2320_s27 }
  0x3f   : > { %p2324_p9 = pneg %p2323_p8  ;;  %p2330_p0 = por %p2329_p12, %p2328_p10 }
  0x41   : > { %p2331_p2 = pnand %p2330_p0, %p2324_p9 }
  0x43   : > { %2334 = shalt.err (!%p2331_p2)
}
  0x44   : > { %1942 = dma.hbm_to_vmem [thread:$0]  (!%p2499_p7), %s2495_s29, 4096, %s2497_s7, %s2503_s12, %s2376_s16, %s2376_s16, %s2377_s17  }
  0x45   : > { %p3076_p11 = scmp.ne.s32.totalorder %s3073_s26, 0 }
  0x46   : > { %s221_s28 = sand.u32 (!%p3076_p11), 1, %s2365_s21   ;;  %p3077_p13 = scmp.ne.s32.totalorder (!%p3076_p11), %s3072_s25, 0 }
  0x47   : > { %219 = sbr.rel (%p3076_p11) target bundleno = 633 (0x279), region = 40  ;;  %s1744_s13 = sshll.u32 (!%p3076_p11), %s221_s28, 8 }
  0x48   : > { %s222_s14 = scalar_lea.sflag (!%p3076_p11), [#allocation4], %s221_s28  ;;  %s2537_s15 = scalar_lea.vmem (!%p3076_p11), [#allocation3], %s1744_s13 }
  0x4e   : > { %2352 = dma.done.wait (%p3077_p13), %s222_s14, 4096  }
  0x4f   : > { %2354 = vsyncadd (%p3077_p13), %s222_s14, 4294963200  ;;  %p3078_p3 = scmp.ne.s32.totalorder %s3071_s24, 0 }
  0x51   : > { %2356 = dma.done.wait (%p3078_p3), [#allocation6], 1024  }
  0x52   : > { %2358 = vsyncadd (%p3078_p3), [#allocation6], 4294966272  ;;  %v1981_v0 = vld [vmem:[#allocation5] sm:$0xff]   ;;  %v1982_v1 = vld [vmem:[#allocation5 + $0x8] sm:$0xff]   ;;  %s1143_s17 = sld [smem:[#allocation2]]  ;;  %s1746_s29 = sshll.u32 %s1735_s4, 6 }
  0x53   : > { %1833 = vmatprep.subr.bf16.mxu0 %v1981_v0  ;;  %1913 = vmatprep.subr.bf16.mxu1 %v1981_v0  ;;  %v1983_v2 = vld [vmem:[#allocation5 + $0x10] sm:$0xff]   ;;  %v1984_v3 = vld [vmem:[#allocation5 + $0x18] sm:$0xff]   ;;  %v1989_v4 = vld [vmem:[%s2537_s15] sm:$0xff]   ;;  %p258_p7 = scmp.lt.s32.totalorder %s1746_s29, 127  ;;  %vm1593_vm0 = vcmask 7168  }
  0x54   : > { %1834 = vmatpush3.bf16.msra.mxu0 %v1981_v0  ;;  %1921 = vmatpush3.bf16.msra.mxu1 %v1981_v0  ;;  %v1990_v5 = vld [vmem:[%s2537_s15 + $0x80] sm:$0xff]   ;;  %v1986_v7 = vld [vmem:[#allocation5 + $0x28] sm:$0xff]   ;;  %v1987_v8 = vld [vmem:[#allocation5 + $0x30] sm:$0xff]  }
  0x55   : > { %1835 = vmatprep.subr.bf16.mxu0 %v1982_v1  ;;  %1914 = vmatprep.subr.bf16.mxu1 %v1982_v1  ;;  %v1985_v6 = vld [vmem:[#allocation5 + $0x20] sm:$0xff]   ;;  %v1988_v9 = vld [vmem:[#allocation5 + $0x38] sm:$0xff]   ;;  %v1991_v10 = vld [vmem:[%s2537_s15 + $0x8] sm:$0xff]   ;;  %s3085_s29 = smov (!%p258_p7, %s1746_s29), 127 }
  0x56   : > { %1849 = vmatprep.mubr.bf16.mxu0 %v1989_v4  ;;  %1881 = vmatprep.mubr.bf16.mxu1 %v1990_v5  ;;  %v1992_v11 = vld [vmem:[%s2537_s15 + $0x88] sm:$0xff]   ;;  %v1993_v12 = vld [vmem:[%s2537_s15 + $0x10] sm:$0xff]   ;;  %v1994_v14 = vld [vmem:[%s2537_s15 + $0x18] sm:$0xff]   ;;  %s1747_s23 = sshll.u32 %s3085_s29, 3 }
  0x57   : > { %v1995_v13 = vld [vmem:[%s2537_s15 + $0x90] sm:$0xff]   ;;  %v1996_v15 = vld [vmem:[%s2537_s15 + $0x98] sm:$0xff]   ;;  %v1997_v16 = vld [vmem:[%s2537_s15 + $0x20] sm:$0xff]   ;;  %s2868_s6 = scalar_lea.vmem %s3066_s5, %s1747_s23 }
  0x58   : > { %1836 = vmatpush3.bf16.msra.mxu0 %v1982_v1  ;;  %1922 = vmatpush3.bf16.msra.mxu1 %v1982_v1  ;;  %v1999_v17 = vld [vmem:[%s2537_s15 + $0xa0] sm:$0xff]   ;;  %v1998_v18 = vld [vmem:[%s2537_s15 + $0x28] sm:$0xff]   ;;  %v2001_v20 = vld [vmem:[%s2537_s15 + $0x30] sm:$0xff]  }
  0x59   : > { %1837 = vmatprep.subr.bf16.mxu0 %v1983_v2  ;;  %1915 = vmatprep.subr.bf16.mxu1 %v1983_v2  ;;  %v2000_v19 = vld [vmem:[%s2537_s15 + $0xa8] sm:$0xff]   ;;  %v2003_v21 = vld [vmem:[%s2537_s15 + $0xb0] sm:$0xff]   ;;  %v2002_v22 = vld [vmem:[%s2537_s15 + $0x38] sm:$0xff]  }
  0x5a   : > { %v2004_v23 = vld [vmem:[%s2537_s15 + $0xb8] sm:$0xff]   ;;  %v2005_v24 = vld [vmem:[%s2537_s15 + $0x40] sm:$0xff]   ;;  %v2006_v26 = vld [vmem:[%s2537_s15 + $0x48] sm:$0xff]  }
  0x5b   : > { %v2007_v25 = vld [vmem:[%s2537_s15 + $0xc0] sm:$0xff]   ;;  %v2008_v27 = vld [vmem:[%s2537_s15 + $0xc8] sm:$0xff]   ;;  %v2009_v28 = vld [vmem:[%s2537_s15 + $0x50] sm:$0xff]  }
  0x5c   : > { %1838 = vmatpush3.bf16.msra.mxu0 %v1983_v2  ;;  %1923 = vmatpush3.bf16.msra.mxu1 %v1983_v2  ;;  %v2011_v29 = vld [vmem:[%s2537_s15 + $0xd0] sm:$0xff]   ;;  %v2010_v30 = vld [vmem:[%s2537_s15 + $0x58] sm:$0xff]   ;;  %v2013_v32 = vld [vmem:[%s2537_s15 + $0x60] sm:$0xff]  }
  0x5d   : > { %1839 = vmatprep.subr.bf16.mxu0 %v1984_v3  ;;  %1916 = vmatprep.subr.bf16.mxu1 %v1984_v3  ;;  %v2012_v31 = vld [vmem:[%s2537_s15 + $0xd8] sm:$0xff]   ;;  %v2015_v33 = vld [vmem:[%s2537_s15 + $0xe0] sm:$0xff]   ;;  %v2014_v34 = vld [vmem:[%s2537_s15 + $0x68] sm:$0xff]  }
  0x5e   : > { %v2016_v35 = vld [vmem:[%s2537_s15 + $0xe8] sm:$0xff]   ;;  %v2017_v36 = vld [vmem:[%s2537_s15 + $0x70] sm:$0xff]   ;;  %v2018_v38 = vld [vmem:[%s2537_s15 + $0x78] sm:$0xff]  }
  0x5f   : > { %v2019_v37 = vld [vmem:[%s2537_s15 + $0xf0] sm:$0xff]   ;;  %v2020_v39 = vld [vmem:[%s2537_s15 + $0xf8] sm:$0xff]   ;;  %v2582_v40 = vld [vmem:[%s3063_s2] ss:$0 sm:$0xff] }
  0x60   : > { %1840 = vmatpush3.bf16.msra.mxu0 %v1984_v3  ;;  %1924 = vmatpush3.bf16.msra.mxu1 %v1984_v3  ;;  %v2590_v50 = vld [vmem:[%s3064_s3] ss:$0 sm:$0xff] }
  0x61   : > { %1841 = vmatprep.subr.bf16.mxu0 %v1985_v6  ;;  %1917 = vmatprep.subr.bf16.mxu1 %v1985_v6 }
  0x64   : > { %1842 = vmatpush3.bf16.msra.mxu0 %v1985_v6  ;;  %1925 = vmatpush3.bf16.msra.mxu1 %v1985_v6 }
  0x65   : > { %1843 = vmatprep.subr.bf16.mxu0 %v1986_v7  ;;  %1918 = vmatprep.subr.bf16.mxu1 %v1986_v7 }
  0x68   : > { %1844 = vmatpush3.bf16.msra.mxu0 %v1986_v7  ;;  %1926 = vmatpush3.bf16.msra.mxu1 %v1986_v7 }
  0x69   : > { %1845 = vmatprep.subr.bf16.mxu0 %v1987_v8  ;;  %1919 = vmatprep.subr.bf16.mxu1 %v1987_v8 }
  0x6c   : > { %1846 = vmatpush3.bf16.msra.mxu0 %v1987_v8  ;;  %1927 = vmatpush3.bf16.msra.mxu1 %v1987_v8 }
  0x6d   : > { %1847 = vmatprep.subr.bf16.mxu0 %v1988_v9  ;;  %1920 = vmatprep.subr.bf16.mxu1 %v1988_v9 }
  0x70   : > { %1848 = vmatpush3.bf16.msra.mxu0 %v1988_v9  ;;  %1928 = vmatpush3.bf16.msra.mxu1 %v1988_v9 }
  0x73   : > { %1850 = vmatmul.mubr.bf16.vlgmr.msra.gmra.mrb[0].mxu0 %v1991_v10  ;;  %1882 = vmatmul.mubr.bf16.vlgmr.msra.gmra.mrb[0].mxu1 %v1992_v11 }
  0x74   : > { %1853 = vmatprep.mubr.bf16.mxu0 %v1993_v12  ;;  %1885 = vmatprep.mubr.bf16.mxu1 %v1995_v13 }
  0x7b   : > { %1854 = vmatmul.mubr.bf16.gmra.mrb[4].mxu0 %v1994_v14  ;;  %1886 = vmatmul.mubr.bf16.gmra.mrb[4].mxu1 %v1996_v15 }
  0x7c   : > { %1857 = vmatprep.mubr.bf16.mxu0 %v1997_v16  ;;  %1889 = vmatprep.mubr.bf16.mxu1 %v1999_v17 }
  0x83   : > { %1858 = vmatmul.mubr.bf16.gmra.mrb[8].mxu0 %v1998_v18  ;;  %1890 = vmatmul.mubr.bf16.gmra.mrb[8].mxu1 %v2000_v19 }
  0x84   : > { %1861 = vmatprep.mubr.bf16.mxu0 %v2001_v20  ;;  %1893 = vmatprep.mubr.bf16.mxu1 %v2003_v21 }
  0x8b   : > { %1862 = vmatmul.mubr.bf16.gmra.mrb[12].mxu0 %v2002_v22  ;;  %1894 = vmatmul.mubr.bf16.gmra.mrb[12].mxu1 %v2004_v23 }
  0x8c   : > { %1865 = vmatprep.mubr.bf16.mxu0 %v2005_v24  ;;  %1897 = vmatprep.mubr.bf16.mxu1 %v2007_v25 }
  0x93   : > { %1866 = vmatmul.mubr.bf16.gmra.mrb[16].mxu0 %v2006_v26  ;;  %1898 = vmatmul.mubr.bf16.gmra.mrb[16].mxu1 %v2008_v27 }
  0x94   : > { %1869 = vmatprep.mubr.bf16.mxu0 %v2009_v28  ;;  %1901 = vmatprep.mubr.bf16.mxu1 %v2011_v29 }
  0x9b   : > { %1870 = vmatmul.mubr.bf16.gmra.mrb[20].mxu0 %v2010_v30  ;;  %1902 = vmatmul.mubr.bf16.gmra.mrb[20].mxu1 %v2012_v31 }
  0x9c   : > { %1873 = vmatprep.mubr.bf16.mxu0 %v2013_v32  ;;  %1905 = vmatprep.mubr.bf16.mxu1 %v2015_v33 }
  0xa3   : > { %1874 = vmatmul.mubr.bf16.gmra.mrb[24].mxu0 %v2014_v34  ;;  %1906 = vmatmul.mubr.bf16.gmra.mrb[24].mxu1 %v2016_v35 }
  0xa4   : > { %1877 = vmatprep.mubr.bf16.mxu0 %v2017_v36  ;;  %1909 = vmatprep.mubr.bf16.mxu1 %v2019_v37 }
  0xab   : > { %1878 = vmatmul.mubr.bf16.gmra.mrb[28].mxu0 %v2018_v38  ;;  %1910 = vmatmul.mubr.bf16.gmra.mrb[28].mxu1 %v2020_v39 }
 0x146   : > { %v1851_v41 = vpop.f32.mrb[0].mxu0  ;;  %v1883_v42 = vpop.f32.mrb[0].mxu1 }
 0x147   : > { %v634_v43 = vadd.f32 %v1851_v41, %v2582_v40  ;;  %v762_v44 = vadd.f32 %v1883_v42, %v2582_v40  ;;  %v625_v45 = vpop.f32.mrb[1].mxu0  ;;  %v753_v46 = vpop.f32.mrb[1].mxu1 }
 0x148   : > { %v626_v47 = vadd.f32 %v2582_v40, %v625_v45  ;;  %v1852_v48 = vpop.f32.mrb[2].mxu0  ;;  %v1884_v49 = vpop.f32.mrb[2].mxu1  ;;  %v754_v56 = vadd.f32 %v2582_v40, %v753_v46 }
 0x149   : > { %v882_v51 = vmax.f32 %v634_v43, 0.0  ;;  %v914_v52 = vmax.f32 %v762_v44, 0.0  ;;  %v637_v53 = vadd.f32 %v1852_v48, %v2582_v40  ;;  %v628_v54 = vpop.f32.mrb[3].mxu0  ;;  %v756_v55 = vpop.f32.mrb[3].mxu1  ;;  %v765_v57 = vadd.f32 %v1884_v49, %v2582_v40 }
 0x14a   : > { %v880_v58 = vmax.f32 %v626_v47, 0.0  ;;  %v629_v62 = vadd.f32 %v2582_v40, %v628_v54  ;;  %v757_v63 = vadd.f32 %v2582_v40, %v756_v55  ;;  %v912_v2 = vmax.f32 %v754_v56, 0.0 }
 0x14b   : > { %v883_v59 = vmax.f32 %v637_v53, 0.0  ;;  %v985_v60 = vmul.f32 %v2590_v50, %v914_v52  ;;  %v953_v61 = vmul.f32 %v2590_v50, %v882_v51  ;;  %v915_v3 = vmax.f32 %v765_v57, 0.0 }
 0x14c   : > { %v951_v5 = vmul.f32 %v2590_v50, %v880_v58  ;;  %v881_v12 = vmax.f32 %v629_v62, 0.0  ;;  %v913_v13 = vmax.f32 %v757_v63, 0.0  ;;  %v983_v17 = vmul.f32 %v2590_v50, %v912_v2 }
 0x14d   : > { %1083 = vadd.xlane.f32.xlu0 %v985_v60  ;;  %1019 = vadd.xlane.f32.xlu1 %v953_v61  ;;  %v954_v4 = vmul.f32 %v2590_v50, %v883_v59  ;;  %v986_v16 = vmul.f32 %v2590_v50, %v915_v3 }
 0x14e   : > { %v1855_v0 = vpop.f32.mrb[4].mxu0  ;;  %v1887_v1 = vpop.f32.mrb[4].mxu1  ;;  %v984_v19 = vmul.f32 %v2590_v50, %v913_v13  ;;  %v952_v25 = vmul.f32 %v2590_v50, %v881_v12 }
 0x14f   : > { %v641_v6 = vpop.f32.mrb[5].mxu0  ;;  %v769_v7 = vpop.f32.mrb[5].mxu1  ;;  %v650_v14 = vadd.f32 %v1855_v0, %v2582_v40  ;;  %v778_v18 = vadd.f32 %v1887_v1, %v2582_v40 }
 0x150   : > { %v1856_v8 = vpop.f32.mrb[6].mxu0  ;;  %v1888_v9 = vpop.f32.mrb[6].mxu1  ;;  %v642_v30 = vadd.f32 %v2582_v40, %v641_v6  ;;  %v770_v38 = vadd.f32 %v2582_v40, %v769_v7 }
 0x151   : > { %1021 = vadd.xlane.f32.xlu1 %v954_v4  ;;  %1015 = vadd.xlane.f32.xlu0 %v951_v5  ;;  %v644_v10 = vpop.f32.mrb[7].mxu0  ;;  %v772_v11 = vpop.f32.mrb[7].mxu1  ;;  %v653_v15 = vadd.f32 %v1856_v8, %v2582_v40  ;;  %v886_v22 = vmax.f32 %v650_v14, 0.0  ;;  %v781_v24 = vadd.f32 %v1888_v9, %v2582_v40  ;;  %v918_v33 = vmax.f32 %v778_v18, 0.0 }
 0x152   : > { %v645_v34 = vadd.f32 %v2582_v40, %v644_v10  ;;  %v884_v39 = vmax.f32 %v642_v30, 0.0  ;;  %v773_v41 = vadd.f32 %v2582_v40, %v772_v11  ;;  %v916_v57 = vmax.f32 %v770_v38, 0.0 }
 0x153   : > { %v887_v23 = vmax.f32 %v653_v15, 0.0  ;;  %v919_v35 = vmax.f32 %v781_v24, 0.0  ;;  %v957_v37 = vmul.f32 %v2590_v50, %v886_v22  ;;  %v989_v44 = vmul.f32 %v2590_v50, %v918_v33 }
 0x154   : > { %v885_v51 = vmax.f32 %v645_v34, 0.0  ;;  %v917_v60 = vmax.f32 %v773_v41, 0.0  ;;  %v955_v7 = vmul.f32 %v2590_v50, %v884_v39  ;;  %v987_v9 = vmul.f32 %v2590_v50, %v916_v57 }
 0x155   : > { %1085 = vadd.xlane.f32.xlu1 %v986_v16  ;;  %1079 = vadd.xlane.f32.xlu0 %v983_v17  ;;  %v958_v36 = vmul.f32 %v2590_v50, %v887_v23  ;;  %v990_v52 = vmul.f32 %v2590_v50, %v919_v35 }
 0x156   : > { %v1859_v20 = vpop.f32.mrb[8].mxu0  ;;  %v1891_v21 = vpop.f32.mrb[8].mxu1  ;;  %v956_v6 = vmul.f32 %v2590_v50, %v885_v51  ;;  %v988_v10 = vmul.f32 %v2590_v50, %v917_v60 }
 0x157   : > { %v657_v26 = vpop.f32.mrb[9].mxu0  ;;  %v785_v27 = vpop.f32.mrb[9].mxu1  ;;  %v666_v42 = vadd.f32 %v1859_v20, %v2582_v40  ;;  %v794_v43 = vadd.f32 %v1891_v21, %v2582_v40 }
 0x158   : > { %v1860_v28 = vpop.f32.mrb[10].mxu0  ;;  %v1892_v29 = vpop.f32.mrb[10].mxu1  ;;  %v658_v45 = vadd.f32 %v2582_v40, %v657_v26  ;;  %v786_v47 = vadd.f32 %v2582_v40, %v785_v27 }
 0x159   : > { %1081 = vadd.xlane.f32.xlu1 %v984_v19  ;;  %1017 = vadd.xlane.f32.xlu0 %v952_v25  ;;  %v660_v31 = vpop.f32.mrb[11].mxu0  ;;  %v788_v32 = vpop.f32.mrb[11].mxu1  ;;  %v669_v46 = vadd.f32 %v1860_v28, %v2582_v40  ;;  %v797_v54 = vadd.f32 %v1892_v29, %v2582_v40  ;;  %v890_v61 = vmax.f32 %v666_v42, 0.0  ;;  %v922_v62 = vmax.f32 %v794_v43, 0.0 }
 0x15a   : > { %v661_v53 = vadd.f32 %v2582_v40, %v660_v31  ;;  %v888_v1 = vmax.f32 %v658_v45, 0.0  ;;  %v920_v3 = vmax.f32 %v786_v47, 0.0  ;;  %v789_v4 = vadd.f32 %v2582_v40, %v788_v32 }
 0x15b   : > { %v891_v2 = vmax.f32 %v669_v46, 0.0  ;;  %v923_v8 = vmax.f32 %v797_v54, 0.0  ;;  %v961_v11 = vmul.f32 %v2590_v50, %v890_v61  ;;  %v993_v12 = vmul.f32 %v2590_v50, %v922_v62 }
 0x15c   : > { %v889_v5 = vmax.f32 %v661_v53, 0.0  ;;  %v921_v13 = vmax.f32 %v789_v4, 0.0  ;;  %v2645_v15 = vmul.f32 %v2590_v50, %v888_v1  ;;  %v2648_v16 = vmul.f32 %v2590_v50, %v920_v3 }
 0x15d   : > { %1029 = vadd.xlane.f32.xlu1 %v958_v36  ;;  %1027 = vadd.xlane.f32.xlu0 %v957_v37  ;;  %v962_v14 = vmul.f32 %v2590_v50, %v891_v2  ;;  %v994_v19 = vmul.f32 %v2590_v50, %v923_v8 }
 0x15e   : > { %v1863_v48 = vpop.f32.mrb[12].mxu0  ;;  %v2621_v49 = vpop.f32.mrb[12].mxu1  ;;  %v2652_v20 = vmul.f32 %v2590_v50, %v889_v5 }
 0x15f   : > { %v2626_v55 = vpop.f32.mrb[13].mxu0  ;;  %v2628_v56 = vpop.f32.mrb[13].mxu1  ;;  %v2657_v25 = vadd.f32 %v1863_v48, %v2582_v40 }
 0x160   : > { %v1864_v58 = vpop.f32.mrb[14].mxu0  ;;  %v2630_v59 = vpop.f32.mrb[14].mxu1  ;;  %v2691_v57 = vadd.f32 %v2582_v40, %v2626_v55 }
 0x161   : > { %1093 = vadd.xlane.f32.xlu1 %v990_v52  ;;  %1091 = vadd.xlane.f32.xlu0 %v989_v44  ;;  %v2632_v63 = vpop.f32.mrb[15].mxu0  ;;  %v2634_v0 = vpop.f32.mrb[15].mxu1  ;;  %v2660_v26 = vadd.f32 %v1864_v58, %v2582_v40  ;;  %v2681_v52 = vmul.f32 %v2590_v50, %v921_v13  ;;  %v2695_v58 = vadd.f32 %v2621_v49, %v2582_v40  ;;  %v894_v2 = vmax.f32 %v2657_v25, 0.0 }
 0x162   : > { %v2706_v3 = vadd.f32 %v2630_v59, %v2582_v40 }
 0x165   : > { %1025 = vadd.xlane.f32.xlu1 %v956_v6  ;;  %1023 = vadd.xlane.f32.xlu0 %v955_v7  ;;  %v895_v6 = vmax.f32 %v2660_v26, 0.0  ;;  %v2713_v7 = vadd.f32 %v2582_v40, %v2632_v63 }
 0x166   : > { %v1867_v17 = vpop.f32.mrb[16].mxu0  ;;  %v1899_v18 = vpop.f32.mrb[16].mxu1 }
 0x167   : > { %v698_v21 = vadd.f32 %v1867_v17, %v2582_v40  ;;  %v689_v22 = vpop.f32.mrb[17].mxu0  ;;  %v826_v23 = vadd.f32 %v1899_v18, %v2582_v40  ;;  %v817_v24 = vpop.f32.mrb[17].mxu1 }
 0x168   : > { %v690_v27 = vadd.f32 %v2582_v40, %v689_v22  ;;  %v1868_v28 = vpop.f32.mrb[18].mxu0  ;;  %v818_v29 = vadd.f32 %v2582_v40, %v817_v24  ;;  %v1900_v30 = vpop.f32.mrb[18].mxu1 }
 0x169   : > { %1089 = vadd.xlane.f32.xlu1 %v988_v10  ;;  %1087 = vadd.xlane.f32.xlu0 %v987_v9  ;;  %v898_v31 = vmax.f32 %v698_v21, 0.0  ;;  %v701_v32 = vadd.f32 %v1868_v28, %v2582_v40  ;;  %v692_v33 = vpop.f32.mrb[19].mxu0  ;;  %v930_v34 = vmax.f32 %v826_v23, 0.0  ;;  %v829_v35 = vadd.f32 %v1900_v30, %v2582_v40  ;;  %v820_v36 = vpop.f32.mrb[19].mxu1 }
 0x16a   : > { %v896_v37 = vmax.f32 %v690_v27, 0.0  ;;  %v693_v38 = vadd.f32 %v2582_v40, %v692_v33  ;;  %v928_v39 = vmax.f32 %v818_v29, 0.0  ;;  %v821_v41 = vadd.f32 %v2582_v40, %v820_v36 }
 0x16b   : > { %v899_v42 = vmax.f32 %v701_v32, 0.0  ;;  %v931_v43 = vmax.f32 %v829_v35, 0.0  ;;  %v2669_v44 = vmul.f32 %v2590_v50, %v898_v31  ;;  %v2672_v45 = vmul.f32 %v2590_v50, %v930_v34 }
 0x16c   : > { %v897_v46 = vmax.f32 %v693_v38, 0.0  ;;  %v929_v47 = vmax.f32 %v821_v41, 0.0  ;;  %v2675_v48 = vmul.f32 %v2590_v50, %v896_v37  ;;  %v2678_v51 = vmul.f32 %v2590_v50, %v928_v39 }
 0x16d   : > { %1037 = vadd.xlane.f32.xlu1 %v962_v14  ;;  %1035 = vadd.xlane.f32.xlu0 %v961_v11  ;;  %v2684_v53 = vmul.f32 %v2590_v50, %v899_v42  ;;  %v2687_v54 = vmul.f32 %v2590_v50, %v931_v43  ;;  %v926_v31 = vmax.f32 %v2695_v58, 0.0  ;;  %v2738_v32 = vadd.f32 %v2582_v40, %v2628_v56 }
 0x16e   : > { %v1871_v60 = vpop.f32.mrb[20].mxu0  ;;  %v1903_v61 = vpop.f32.mrb[20].mxu1  ;;  %v2698_v62 = vmul.f32 %v2590_v50, %v897_v46  ;;  %v2701_v1 = vmul.f32 %v2590_v50, %v929_v47  ;;  %v892_v35 = vmax.f32 %v2691_v57, 0.0  ;;  %v2749_v36 = vadd.f32 %v2582_v40, %v2634_v0 }
 0x16f   : > { %v714_v55 = vadd.f32 %v1871_v60, %v2582_v40  ;;  %v705_v4 = vpop.f32.mrb[21].mxu0  ;;  %v842_v49 = vadd.f32 %v1903_v61, %v2582_v40  ;;  %v833_v5 = vpop.f32.mrb[21].mxu1  ;;  %v927_v38 = vmax.f32 %v2706_v3, 0.0  ;;  %v965_v39 = vmul.f32 %v2590_v50, %v894_v2 }
 0x170   : > { %v706_v8 = vadd.f32 %v2582_v40, %v705_v4  ;;  %v1872_v9 = vpop.f32.mrb[22].mxu0  ;;  %v834_v10 = vadd.f32 %v2582_v40, %v833_v5  ;;  %v1904_v11 = vpop.f32.mrb[22].mxu1  ;;  %v893_v0 = vmax.f32 %v2713_v7, 0.0  ;;  %v966_v47 = vmul.f32 %v2590_v50, %v895_v6 }
 0x171   : > { %1101 = vadd.xlane.f32.xlu1 %v994_v19  ;;  %1099 = vadd.xlane.f32.xlu0 %v993_v12  ;;  %v902_v59 = vmax.f32 %v714_v55, 0.0  ;;  %v717_v13 = vadd.f32 %v1872_v9, %v2582_v40  ;;  %v708_v14 = vpop.f32.mrb[23].mxu0  ;;  %v934_v17 = vmax.f32 %v842_v49, 0.0  ;;  %v845_v18 = vadd.f32 %v1904_v11, %v2582_v40  ;;  %v836_v21 = vpop.f32.mrb[23].mxu1 }
 0x172   : > { %v900_v22 = vmax.f32 %v706_v8, 0.0  ;;  %v709_v63 = vadd.f32 %v2582_v40, %v708_v14  ;;  %v932_v23 = vmax.f32 %v834_v10, 0.0  ;;  %v837_v24 = vadd.f32 %v2582_v40, %v836_v21 }
 0x173   : > { %v903_v25 = vmax.f32 %v717_v13, 0.0  ;;  %v935_v26 = vmax.f32 %v845_v18, 0.0  ;;  %v2722_v27 = vmul.f32 %v2590_v50, %v902_v59  ;;  %v2725_v12 = vmul.f32 %v2590_v50, %v934_v17 }
 0x174   : > { %v901_v19 = vmax.f32 %v709_v63, 0.0  ;;  %v933_v28 = vmax.f32 %v837_v24, 0.0  ;;  %v2728_v29 = vmul.f32 %v2590_v50, %v900_v22  ;;  %v2731_v30 = vmul.f32 %v2590_v50, %v932_v23 }
 0x175   : > { %1033 = vadd.xlane.f32.xlu1 %v2652_v20  ;;  %1031 = vadd.xlane.f32.xlu0 %v2645_v15  ;;  %v2741_v33 = vmul.f32 %v2590_v50, %v903_v25  ;;  %v2744_v34 = vmul.f32 %v2590_v50, %v935_v26  ;;  %v924_v22 = vmax.f32 %v2738_v32, 0.0  ;;  %v997_v63 = vmul.f32 %v2590_v50, %v926_v31 }
 0x176   : > { %v1875_v37 = vpop.f32.mrb[24].mxu0  ;;  %v1907_v20 = vpop.f32.mrb[24].mxu1  ;;  %v2752_v15 = vmul.f32 %v2590_v50, %v901_v19  ;;  %v2755_v56 = vmul.f32 %v2590_v50, %v933_v28  ;;  %v925_v19 = vmax.f32 %v2749_v36, 0.0  ;;  %v998_v28 = vmul.f32 %v2590_v50, %v927_v38 }
 0x177   : > { %v730_v41 = vadd.f32 %v1875_v37, %v2582_v40  ;;  %v721_v42 = vpop.f32.mrb[25].mxu0  ;;  %v858_v43 = vadd.f32 %v1907_v20, %v2582_v40  ;;  %v849_v46 = vpop.f32.mrb[25].mxu1  ;;  %v964_v31 = vmul.f32 %v2590_v50, %v893_v0 }
 0x178   : > { %v722_v57 = vadd.f32 %v2582_v40, %v721_v42  ;;  %v1876_v58 = vpop.f32.mrb[26].mxu0  ;;  %v850_v60 = vadd.f32 %v2582_v40, %v849_v46  ;;  %v1908_v61 = vpop.f32.mrb[26].mxu1 }
 0x179   : > { %1097 = vadd.xlane.f32.xlu1 %v2681_v52  ;;  %1095 = vadd.xlane.f32.xlu0 %v2648_v16  ;;  %v906_v2 = vmax.f32 %v730_v41, 0.0  ;;  %v733_v3 = vadd.f32 %v1876_v58, %v2582_v40  ;;  %v724_v55 = vpop.f32.mrb[27].mxu0  ;;  %v938_v4 = vmax.f32 %v858_v43, 0.0  ;;  %v861_v49 = vadd.f32 %v1908_v61, %v2582_v40  ;;  %v852_v5 = vpop.f32.mrb[27].mxu1 }
 0x17a   : > { %v904_v7 = vmax.f32 %v722_v57, 0.0  ;;  %v725_v6 = vadd.f32 %v2582_v40, %v724_v55  ;;  %v936_v8 = vmax.f32 %v850_v60, 0.0  ;;  %v853_v9 = vadd.f32 %v2582_v40, %v852_v5 }
 0x17b   : > { %v907_v10 = vmax.f32 %v733_v3, 0.0  ;;  %v939_v11 = vmax.f32 %v861_v49, 0.0  ;;  %v2772_v52 = vmul.f32 %v2590_v50, %v906_v2  ;;  %v2775_v16 = vmul.f32 %v2590_v50, %v938_v4 }
 0x17c   : > { %v905_v59 = vmax.f32 %v725_v6, 0.0  ;;  %v937_v13 = vmax.f32 %v853_v9, 0.0  ;;  %v2778_v14 = vmul.f32 %v2590_v50, %v904_v7  ;;  %v2781_v17 = vmul.f32 %v2590_v50, %v936_v8 }
 0x17d   : > { %1045 = vadd.xlane.f32.xlu1 %v966_v47  ;;  %1043 = vadd.xlane.f32.xlu0 %v965_v39  ;;  %v2784_v18 = vmul.f32 %v2590_v50, %v907_v10  ;;  %v2787_v21 = vmul.f32 %v2590_v50, %v939_v11  ;;  %v963_v41 = vmul.f32 %v2590_v50, %v892_v35 }
 0x17e   : > { %v1879_v23 = vpop.f32.mrb[28].mxu0  ;;  %v2792_v24 = vmul.f32 %v2590_v50, %v905_v59  ;;  %v1911_v25 = vpop.f32.mrb[28].mxu1  ;;  %v2795_v26 = vmul.f32 %v2590_v50, %v937_v13  ;;  %v996_v13 = vmul.f32 %v2590_v50, %v925_v19 }
 0x17f   : > { %v746_v37 = vadd.f32 %v1879_v23, %v2582_v40  ;;  %v737_v20 = vpop.f32.mrb[29].mxu0  ;;  %v874_v39 = vadd.f32 %v1911_v25, %v2582_v40  ;;  %v865_v32 = vpop.f32.mrb[29].mxu1 }
 0x180   : > { %v738_v42 = vadd.f32 %v2582_v40, %v737_v20  ;;  %v1880_v43 = vpop.f32.mrb[30].mxu0  ;;  %v866_v46 = vadd.f32 %v2582_v40, %v865_v32  ;;  %v1912_v47 = vpop.f32.mrb[30].mxu1 }
 0x181   : > { %1109 = vadd.xlane.f32.xlu1 %v998_v28  ;;  %1107 = vadd.xlane.f32.xlu0 %v997_v63  ;;  %v910_v36 = vmax.f32 %v746_v37, 0.0  ;;  %v749_v38 = vadd.f32 %v1880_v43, %v2582_v40  ;;  %v740_v57 = vpop.f32.mrb[31].mxu0  ;;  %v942_v58 = vmax.f32 %v874_v39, 0.0  ;;  %v877_v60 = vadd.f32 %v1912_v47, %v2582_v40  ;;  %v868_v61 = vpop.f32.mrb[31].mxu1 }
 0x182   : > { %v908_v2 = vmax.f32 %v738_v42, 0.0  ;;  %v741_v0 = vadd.f32 %v2582_v40, %v740_v57  ;;  %v940_v35 = vmax.f32 %v866_v46, 0.0  ;;  %v869_v3 = vadd.f32 %v2582_v40, %v868_v61 }
 0x183   : > { %v911_v55 = vmax.f32 %v749_v38, 0.0  ;;  %v943_v4 = vmax.f32 %v877_v60, 0.0  ;;  %v981_v49 = vmul.f32 %v2590_v50, %v910_v36  ;;  %v1013_v5 = vmul.f32 %v2590_v50, %v942_v58 }
 0x184   : > { %v909_v7 = vmax.f32 %v741_v0, 0.0  ;;  %v941_v6 = vmax.f32 %v869_v3, 0.0  ;;  %v979_v8 = vmul.f32 %v2590_v50, %v908_v2  ;;  %v1011_v9 = vmul.f32 %v2590_v50, %v940_v35 }
 0x185   : > { %1041 = vadd.xlane.f32.xlu1 %v964_v31  ;;  %1039 = vadd.xlane.f32.xlu0 %v963_v41  ;;  %v982_v10 = vmul.f32 %v2590_v50, %v911_v55  ;;  %v1014_v11 = vmul.f32 %v2590_v50, %v943_v4  ;;  %v995_v63 = vmul.f32 %v2590_v50, %v924_v22 }
 0x186   : > { %v980_v40 = vmul.f32 %v2590_v50, %v909_v7  ;;  %v1012_v59 = vmul.f32 %v2590_v50, %v941_v6  ;;  %v2843_v50 = vstv %s1143_s17 }
 0x189   : > { %1105 = vadd.xlane.f32.xlu1 %v996_v13  ;;  %1103 = vadd.xlane.f32.xlu0 %v995_v63 }
 0x18d   : > { %1053 = vadd.xlane.f32.xlu1 %v2684_v53  ;;  %1051 = vadd.xlane.f32.xlu0 %v2669_v44 }
 0x191   : > { %1117 = vadd.xlane.f32.xlu1 %v2687_v54  ;;  %1115 = vadd.xlane.f32.xlu0 %v2672_v45 }
 0x195   : > { %1049 = vadd.xlane.f32.xlu1 %v2698_v62  ;;  %1047 = vadd.xlane.f32.xlu0 %v2675_v48 }
 0x199   : > { %1113 = vadd.xlane.f32.xlu1 %v2701_v1  ;;  %1111 = vadd.xlane.f32.xlu0 %v2678_v51 }
 0x19d   : > { %1061 = vadd.xlane.f32.xlu1 %v2741_v33  ;;  %1059 = vadd.xlane.f32.xlu0 %v2722_v27 }
 0x1a1   : > { %1125 = vadd.xlane.f32.xlu1 %v2744_v34  ;;  %1123 = vadd.xlane.f32.xlu0 %v2725_v12 }
 0x1a5   : > { %1057 = vadd.xlane.f32.xlu1 %v2752_v15  ;;  %1055 = vadd.xlane.f32.xlu0 %v2728_v29 }
 0x1a9   : > { %1121 = vadd.xlane.f32.xlu1 %v2755_v56  ;;  %1119 = vadd.xlane.f32.xlu0 %v2731_v30 }
 0x1ad   : > { %1069 = vadd.xlane.f32.xlu1 %v2784_v18  ;;  %1067 = vadd.xlane.f32.xlu0 %v2772_v52 }
 0x1b1   : > { %1133 = vadd.xlane.f32.xlu1 %v2787_v21  ;;  %1131 = vadd.xlane.f32.xlu0 %v2775_v16 }
 0x1b5   : > { %1065 = vadd.xlane.f32.xlu1 %v2792_v24  ;;  %1063 = vadd.xlane.f32.xlu0 %v2778_v14 }
 0x1b9   : > { %1129 = vadd.xlane.f32.xlu1 %v2795_v26  ;;  %1127 = vadd.xlane.f32.xlu0 %v2781_v17 }
 0x1bd   : > { %1077 = vadd.xlane.f32.xlu1 %v982_v10  ;;  %1075 = vadd.xlane.f32.xlu0 %v981_v49 }
 0x1c1   : > { %1073 = vadd.xlane.f32.xlu1 %v980_v40  ;;  %1071 = vadd.xlane.f32.xlu0 %v979_v8 }
 0x1c5   : > { %1137 = vadd.xlane.f32.xlu1 %v1012_v59  ;;  %1135 = vadd.xlane.f32.xlu0 %v1011_v9 }
 0x1c9   : > { %1141 = vadd.xlane.f32.xlu1 %v1014_v11  ;;  %1139 = vadd.xlane.f32.xlu0 %v1013_v5 }
 0x1da   : > { %v1084_v44 = vpop.xlane.xlu0 %1083  ;;  %v1020_v45 = vpop.xlane.xlu1 %1019 }
 0x1db   : > { %v1179_v48 = vadd.f32 %v2843_v50, %v1084_v44  ;;  %v1147_v51 = vadd.f32 %v2843_v50, %v1020_v45 }
 0x1dd   : > { %v1243_v53 = vsub.f32 0.0, %v1179_v48  ;;  %v1211_v54 = vsub.f32 0.0, %v1147_v51 }
 0x1de   : > { %v1022_v62 = vpop.xlane.xlu1 %1021  ;;  %v1016_v1 = vpop.xlane.xlu0 %1015 }
 0x1df   : > { %v1341_v27 = vmul.f32 1.442695, %v1243_v53  ;;  %v1277_v12 = vmul.f32 1.442695, %v1211_v54  ;;  %v1148_v29 = vadd.f32 %v2843_v50, %v1022_v62  ;;  %v1145_v30 = vadd.f32 %v2843_v50, %v1016_v1 }
 0x1e1   : > { %2021 = vpow2.f32 %v1341_v27  ;;  %v1212_v33 = vsub.f32 0.0, %v1148_v29  ;;  %v1209_v34 = vsub.f32 0.0, %v1145_v30 }
 0x1e2   : > { %2023 = vpow2.f32 %v1277_v12  ;;  %v1086_v15 = vpop.xlane.xlu1 %1085  ;;  %v1080_v56 = vpop.xlane.xlu0 %1079 }
 0x1e3   : > { %v1279_v52 = vmul.f32 1.442695, %v1212_v33  ;;  %v1273_v16 = vmul.f32 1.442695, %v1209_v34  ;;  %v1180_v14 = vadd.f32 %v2843_v50, %v1086_v15  ;;  %v1177_v17 = vadd.f32 %v2843_v50, %v1080_v56 }
 0x1e5   : > { %2025 = vpow2.f32 %v1279_v52  ;;  %v1244_v18 = vsub.f32 0.0, %v1180_v14  ;;  %v1241_v21 = vsub.f32 0.0, %v1177_v17 }
 0x1e6   : > { %2027 = vpow2.f32 %v1273_v16  ;;  %v1082_v22 = vpop.xlane.xlu1 %1081  ;;  %v1018_v23 = vpop.xlane.xlu0 %1017 }
 0x1e7   : > { %v1343_v24 = vmul.f32 1.442695, %v1244_v18  ;;  %v1337_v25 = vmul.f32 1.442695, %v1241_v21  ;;  %v1178_v26 = vadd.f32 %v2843_v50, %v1082_v22  ;;  %v1146_v19 = vadd.f32 %v2843_v50, %v1018_v23 }
 0x1e9   : > { %2029 = vpow2.f32 %v1343_v24  ;;  %v1242_v28 = vsub.f32 0.0, %v1178_v26  ;;  %v1210_v37 = vsub.f32 0.0, %v1146_v19 }
 0x1ea   : > { %2031 = vpow2.f32 %v1337_v25  ;;  %v1030_v20 = vpop.xlane.xlu1 %1029  ;;  %v1028_v39 = vpop.xlane.xlu0 %1027 }
 0x1eb   : > { %v2022_v32 = vpop.eup %2021  ;;  %v1339_v31 = vmul.f32 1.442695, %v1242_v28  ;;  %v1152_v41 = vadd.f32 %v2843_v50, %v1030_v20  ;;  %v1151_v42 = vadd.f32 %v2843_v50, %v1028_v39  ;;  %v1275_v47 = vmul.f32 1.442695, %v1210_v37 }
 0x1ec   : > { %v2024_v43 = vpop.eup %2023  ;;  %v1435_v46 = vadd.f32 1.0, %v2022_v32 }
 0x1ed   : > { %v1403_v36 = vadd.f32 1.0, %v2024_v43  ;;  %2033 = vpow2.f32 %v1339_v31  ;;  %v1216_v38 = vsub.f32 0.0, %v1152_v41  ;;  %v1215_v57 = vsub.f32 0.0, %v1151_v42 }
 0x1ee   : > { %2035 = vrcp.f32 %v1435_v46  ;;  %v1094_v58 = vpop.xlane.xlu1 %1093  ;;  %v1092_v60 = vpop.xlane.xlu0 %1091 }
 0x1ef   : > { %v2026_v61 = vpop.eup %2025  ;;  %2037 = vrcp.f32 %v1403_v36  ;;  %v1287_v2 = vmul.f32 1.442695, %v1216_v38  ;;  %v1184_v0 = vadd.f32 %v2843_v50, %v1094_v58  ;;  %v1285_v55 = vmul.f32 1.442695, %v1215_v57 }
 0x1f0   : > { %v2028_v35 = vpop.eup %2027  ;;  %v1404_v3 = vadd.f32 1.0, %v2026_v61  ;;  %2039 = vpow2.f32 %v1275_v47  ;;  %v1183_v4 = vadd.f32 %v2843_v50, %v1092_v60 }
 0x1f1   : > { %v1401_v49 = vadd.f32 1.0, %v2028_v35  ;;  %2041 = vpow2.f32 %v1287_v2  ;;  %v1248_v5 = vsub.f32 0.0, %v1184_v0 }
 0x1f2   : > { %2043 = vrcp.f32 %v1404_v3  ;;  %v1247_v7 = vsub.f32 0.0, %v1183_v4  ;;  %v1026_v6 = vpop.xlane.xlu1 %1025  ;;  %v1024_v8 = vpop.xlane.xlu0 %1023 }
 0x1f3   : > { %v2030_v9 = vpop.eup %2029  ;;  %2045 = vrcp.f32 %v1401_v49  ;;  %v1351_v10 = vmul.f32 1.442695, %v1248_v5  ;;  %v1150_v11 = vadd.f32 %v2843_v50, %v1026_v6  ;;  %v1149_v40 = vadd.f32 %v2843_v50, %v1024_v8 }
 0x1f4   : > { %v2032_v59 = vpop.eup %2031  ;;  %v1436_v13 = vadd.f32 1.0, %v2030_v9  ;;  %2047 = vpow2.f32 %v1285_v55  ;;  %v1349_v63 = vmul.f32 1.442695, %v1247_v7 }
 0x1f5   : > { %v1433_v44 = vadd.f32 1.0, %v2032_v59  ;;  %2049 = vpow2.f32 %v1351_v10  ;;  %v1214_v45 = vsub.f32 0.0, %v1150_v11  ;;  %v1213_v48 = vsub.f32 0.0, %v1149_v40 }
 0x1f6   : > { %2051 = vrcp.f32 %v1436_v13  ;;  %v1090_v51 = vpop.xlane.xlu1 %1089  ;;  %v1088_v53 = vpop.xlane.xlu0 %1087 }
 0x1f7   : > { %v2034_v54 = vpop.eup %2033  ;;  %2053 = vrcp.f32 %v1433_v44  ;;  %v1283_v62 = vmul.f32 1.442695, %v1214_v45  ;;  %v1281_v1 = vmul.f32 1.442695, %v1213_v48  ;;  %v1182_v27 = vadd.f32 %v2843_v50, %v1090_v51 }
 0x1f8   : > { %v2036_v12 = vpop.eup %2035  ;;  %v1434_v29 = vadd.f32 1.0, %v2034_v54  ;;  %2055 = vpow2.f32 %v1349_v63  ;;  %v1181_v30 = vadd.f32 %v2843_v50, %v1088_v53 }
 0x1f9   : > { %v2038_v33 = vpop.eup %2037  ;;  %1628 = vst.msk [vmem:[%s2868_s6 + $0x110] sm:$0xff] %vm1593_vm0, %v2036_v12  ;;  %2057 = vpow2.f32 %v1283_v62  ;;  %v1246_v34 = vsub.f32 0.0, %v1182_v27 }
 0x1fa   : > { %v2040_v15 = vpop.eup %2039  ;;  %1596 = vst.msk [vmem:[%s2868_s6 + $0x10] sm:$0xff] %vm1593_vm0, %v2038_v33  ;;  %2059 = vrcp.f32 %v1434_v29  ;;  %v1245_v56 = vsub.f32 0.0, %v1181_v30  ;;  %v1038_v52 = vpop.xlane.xlu1 %1037 }
 0x1fb   : > { %v1036_v16 = vpop.xlane.xlu0 %1035  ;;  %v2042_v14 = vpop.eup %2041  ;;  %v1402_v17 = vadd.f32 1.0, %v2040_v15  ;;  %2061 = vpow2.f32 %v1281_v1  ;;  %v1347_v18 = vmul.f32 1.442695, %v1246_v34  ;;  %v1156_v21 = vadd.f32 %v2843_v50, %v1038_v52 }
 0x1fc   : > { %v2044_v22 = vpop.eup %2043  ;;  %v1408_v23 = vadd.f32 1.0, %v2042_v14  ;;  %v1345_v24 = vmul.f32 1.442695, %v1245_v56  ;;  %v1155_v25 = vadd.f32 %v2843_v50, %v1036_v16 }
 0x1fd   : > { %v2046_v26 = vpop.eup %2045  ;;  %1597 = vst.msk [vmem:[%s2868_s6 + $0x18] sm:$0xff] %vm1593_vm0, %v2044_v22  ;;  %2063 = vrcp.f32 %v1402_v17  ;;  %v1220_v19 = vsub.f32 0.0, %v1156_v21 }
 0x1fe   : > { %v2048_v28 = vpop.eup %2047  ;;  %1594 = vst.msk [vmem:[%s2868_s6] sm:$0xff] %vm1593_vm0, %v2046_v26  ;;  %2065 = vrcp.f32 %v1408_v23  ;;  %v1219_v37 = vsub.f32 0.0, %v1155_v25  ;;  %v1102_v20 = vpop.xlane.xlu1 %1101 }
 0x1ff   : > { %v1100_v39 = vpop.xlane.xlu0 %1099  ;;  %v2050_v32 = vpop.eup %2049  ;;  %v1407_v31 = vadd.f32 1.0, %v2048_v28  ;;  %2067 = vpow2.f32 %v1347_v18  ;;  %v1295_v41 = vmul.f32 1.442695, %v1220_v19  ;;  %v1188_v42 = vadd.f32 %v2843_v50, %v1102_v20 }
 0x200   : > { %v2052_v43 = vpop.eup %2051  ;;  %v1440_v46 = vadd.f32 1.0, %v2050_v32  ;;  %2069 = vpow2.f32 %v1345_v24  ;;  %v1293_v47 = vmul.f32 1.442695, %v1219_v37  ;;  %v1187_v36 = vadd.f32 %v2843_v50, %v1100_v39 }
 0x201   : > { %v2054_v38 = vpop.eup %2053  ;;  %1629 = vst.msk [vmem:[%s2868_s6 + $0x118] sm:$0xff] %vm1593_vm0, %v2052_v43  ;;  %2071 = vrcp.f32 %v1407_v31  ;;  %v1252_v57 = vsub.f32 0.0, %v1188_v42 }
 0x202   : > { %v2056_v58 = vpop.eup %2055  ;;  %1626 = vst.msk [vmem:[%s2868_s6 + $0x100] sm:$0xff] %vm1593_vm0, %v2054_v38  ;;  %2073 = vrcp.f32 %v1440_v46  ;;  %v1251_v60 = vsub.f32 0.0, %v1187_v36  ;;  %v1034_v61 = vpop.xlane.xlu1 %1033 }
 0x203   : > { %v1032_v2 = vpop.xlane.xlu0 %1031  ;;  %v2058_v0 = vpop.eup %2057  ;;  %v1439_v35 = vadd.f32 1.0, %v2056_v58  ;;  %2075 = vpow2.f32 %v1295_v41  ;;  %v1359_v3 = vmul.f32 1.442695, %v1252_v57  ;;  %v1154_v55 = vadd.f32 %v2843_v50, %v1034_v61 }
 0x204   : > { %v2060_v4 = vpop.eup %2059  ;;  %v1406_v49 = vadd.f32 1.0, %v2058_v0  ;;  %2077 = vpow2.f32 %v1293_v47  ;;  %v1153_v5 = vadd.f32 %v2843_v50, %v1032_v2  ;;  %v1357_v6 = vmul.f32 1.442695, %v1251_v60 }
 0x205   : > { %v2062_v7 = vpop.eup %2061  ;;  %1627 = vst.msk [vmem:[%s2868_s6 + $0x108] sm:$0xff] %vm1593_vm0, %v2060_v4  ;;  %2079 = vrcp.f32 %v1439_v35  ;;  %v1218_v8 = vsub.f32 0.0, %v1154_v55 }
 0x206   : > { %2081 = vrcp.f32 %v1406_v49  ;;  %v1405_v9 = vadd.f32 1.0, %v2062_v7  ;;  %v1217_v10 = vsub.f32 0.0, %v1153_v5  ;;  %v1098_v11 = vpop.xlane.xlu1 %1097 }
 0x207   : > { %v1096_v40 = vpop.xlane.xlu0 %1095  ;;  %v2064_v59 = vpop.eup %2063  ;;  %2083 = vpow2.f32 %v1359_v3  ;;  %v1291_v13 = vmul.f32 1.442695, %v1218_v8  ;;  %v1186_v63 = vadd.f32 %v2843_v50, %v1098_v11 }
 0x208   : > { %v1185_v44 = vadd.f32 %v2843_v50, %v1096_v40  ;;  %v2066_v45 = vpop.eup %2065  ;;  %1595 = vst.msk [vmem:[%s2868_s6 + $0x8] sm:$0xff] %vm1593_vm0, %v2064_v59  ;;  %2085 = vrcp.f32 %v1405_v9  ;;  %v1289_v48 = vmul.f32 1.442695, %v1217_v10 }
 0x209   : > { %v2068_v51 = vpop.eup %2067  ;;  %1601 = vst.msk [vmem:[%s2868_s6 + $0x38] sm:$0xff] %vm1593_vm0, %v2066_v45  ;;  %2087 = vpow2.f32 %v1357_v6  ;;  %v1250_v53 = vsub.f32 0.0, %v1186_v63 }
 0x20a   : > { %v1249_v54 = vsub.f32 0.0, %v1185_v44  ;;  %v2070_v62 = vpop.eup %2069  ;;  %v1438_v1 = vadd.f32 1.0, %v2068_v51  ;;  %2089 = vpow2.f32 %v1291_v13  ;;  %v1046_v27 = vpop.xlane.xlu1 %1045 }
 0x20b   : > { %v1044_v12 = vpop.xlane.xlu0 %1043  ;;  %v2072_v29 = vpop.eup %2071  ;;  %v1437_v30 = vadd.f32 1.0, %v2070_v62  ;;  %2091 = vpow2.f32 %v1289_v48  ;;  %v1355_v33 = vmul.f32 1.442695, %v1250_v53  ;;  %v1160_v56 = vadd.f32 %v2843_v50, %v1046_v27 }
 0x20c   : > { %v1353_v34 = vmul.f32 1.442695, %v1249_v54  ;;  %v2074_v15 = vpop.eup %2073  ;;  %1600 = vst.msk [vmem:[%s2868_s6 + $0x30] sm:$0xff] %vm1593_vm0, %v2072_v29  ;;  %2093 = vrcp.f32 %v1438_v1  ;;  %v1159_v52 = vadd.f32 %v2843_v50, %v1044_v12 }
 0x20d   : > { %v2076_v16 = vpop.eup %2075  ;;  %1633 = vst.msk [vmem:[%s2868_s6 + $0x138] sm:$0xff] %vm1593_vm0, %v2074_v15  ;;  %2095 = vrcp.f32 %v1437_v30  ;;  %v1224_v18 = vsub.f32 0.0, %v1160_v56 }
 0x20e   : > { %v2078_v14 = vpop.eup %2077  ;;  %v1412_v17 = vadd.f32 1.0, %v2076_v16  ;;  %2097 = vpow2.f32 %v1355_v33  ;;  %v1223_v21 = vsub.f32 0.0, %v1159_v52  ;;  %v1110_v22 = vpop.xlane.xlu1 %1109 }
 0x20f   : > { %v1108_v23 = vpop.xlane.xlu0 %1107  ;;  %v2080_v24 = vpop.eup %2079  ;;  %v1411_v25 = vadd.f32 1.0, %v2078_v14  ;;  %2099 = vpow2.f32 %v1353_v34  ;;  %v1192_v26 = vadd.f32 %v2843_v50, %v1110_v22  ;;  %v1303_v37 = vmul.f32 1.442695, %v1224_v18 }
 0x210   : > { %v1191_v19 = vadd.f32 %v2843_v50, %v1108_v23  ;;  %v2082_v28 = vpop.eup %2081  ;;  %1632 = vst.msk [vmem:[%s2868_s6 + $0x130] sm:$0xff] %vm1593_vm0, %v2080_v24  ;;  %2101 = vrcp.f32 %v1412_v17  ;;  %v1301_v20 = vmul.f32 1.442695, %v1223_v21 }
 0x211   : > { %v2084_v39 = vpop.eup %2083  ;;  %1599 = vst.msk [vmem:[%s2868_s6 + $0x28] sm:$0xff] %vm1593_vm0, %v2082_v28  ;;  %2103 = vrcp.f32 %v1411_v25  ;;  %v1256_v32 = vsub.f32 0.0, %v1192_v26 }
 0x212   : > { %v1255_v31 = vsub.f32 0.0, %v1191_v19  ;;  %v2086_v41 = vpop.eup %2085  ;;  %v1444_v42 = vadd.f32 1.0, %v2084_v39  ;;  %2105 = vpow2.f32 %v1303_v37  ;;  %v1042_v43 = vpop.xlane.xlu1 %1041 }
 0x213   : > { %v1040_v46 = vpop.xlane.xlu0 %1039  ;;  %v2088_v47 = vpop.eup %2087  ;;  %1598 = vst.msk [vmem:[%s2868_s6 + $0x20] sm:$0xff] %vm1593_vm0, %v2086_v41  ;;  %2107 = vpow2.f32 %v1301_v20  ;;  %v1367_v36 = vmul.f32 1.442695, %v1256_v32  ;;  %v1158_v38 = vadd.f32 %v2843_v50, %v1042_v43 }
 0x214   : > { %v2090_v57 = vpop.eup %2089  ;;  %2109 = vrcp.f32 %v1444_v42  ;;  %v1443_v58 = vadd.f32 1.0, %v2088_v47  ;;  %v1157_v60 = vadd.f32 %v2843_v50, %v1040_v46  ;;  %v1365_v0 = vmul.f32 1.442695, %v1255_v31 }
 0x215   : > { %v2092_v61 = vpop.eup %2091  ;;  %v1410_v2 = vadd.f32 1.0, %v2090_v57  ;;  %2111 = vpow2.f32 %v1367_v36  ;;  %v1222_v35 = vsub.f32 0.0, %v1158_v38 }
 0x216   : > { %v2094_v3 = vpop.eup %2093  ;;  %2113 = vrcp.f32 %v1443_v58  ;;  %v1409_v55 = vadd.f32 1.0, %v2092_v61  ;;  %v1221_v4 = vsub.f32 0.0, %v1157_v60  ;;  %v1106_v49 = vpop.xlane.xlu1 %1105 }
 0x217   : > { %v1104_v5 = vpop.xlane.xlu0 %1103  ;;  %v2096_v7 = vpop.eup %2095  ;;  %1631 = vst.msk [vmem:[%s2868_s6 + $0x128] sm:$0xff] %vm1593_vm0, %v2094_v3  ;;  %2115 = vrcp.f32 %v1410_v2  ;;  %v1299_v6 = vmul.f32 1.442695, %v1222_v35  ;;  %v1190_v8 = vadd.f32 %v2843_v50, %v1106_v49 }
 0x218   : > { %v1189_v9 = vadd.f32 %v2843_v50, %v1104_v5  ;;  %v2098_v10 = vpop.eup %2097  ;;  %1630 = vst.msk [vmem:[%s2868_s6 + $0x120] sm:$0xff] %vm1593_vm0, %v2096_v7  ;;  %2117 = vrcp.f32 %v1409_v55  ;;  %v1297_v11 = vmul.f32 1.442695, %v1221_v4 }
 0x219   : > { %v2100_v40 = vpop.eup %2099  ;;  %v1442_v59 = vadd.f32 1.0, %v2098_v10  ;;  %2119 = vpow2.f32 %v1365_v0  ;;  %v1254_v13 = vsub.f32 0.0, %v1190_v8 }
 0x21a   : > { %v1253_v63 = vsub.f32 0.0, %v1189_v9  ;;  %v2102_v44 = vpop.eup %2101  ;;  %v1441_v45 = vadd.f32 1.0, %v2100_v40  ;;  %2121 = vpow2.f32 %v1299_v6  ;;  %v1054_v48 = vpop.xlane.xlu1 %1053 }
 0x21b   : > { %v1052_v51 = vpop.xlane.xlu0 %1051  ;;  %v2104_v53 = vpop.eup %2103  ;;  %1605 = vst.msk [vmem:[%s2868_s6 + $0x58] sm:$0xff] %vm1593_vm0, %v2102_v44  ;;  %2123 = vrcp.f32 %v1442_v59  ;;  %v1363_v54 = vmul.f32 1.442695, %v1254_v13  ;;  %v1164_v62 = vadd.f32 %v2843_v50, %v1054_v48 }
 0x21c   : > { %v2106_v1 = vpop.eup %2105  ;;  %1604 = vst.msk [vmem:[%s2868_s6 + $0x50] sm:$0xff] %vm1593_vm0, %v2104_v53  ;;  %2125 = vrcp.f32 %v1441_v45  ;;  %v1163_v27 = vadd.f32 %v2843_v50, %v1052_v51  ;;  %v1361_v30 = vmul.f32 1.442695, %v1253_v63 }
 0x21d   : > { %v2108_v12 = vpop.eup %2107  ;;  %v1416_v29 = vadd.f32 1.0, %v2106_v1  ;;  %2127 = vpow2.f32 %v1297_v11  ;;  %v1228_v33 = vsub.f32 0.0, %v1164_v62 }
 0x21e   : > { %v2110_v34 = vpop.eup %2109  ;;  %v1415_v15 = vadd.f32 1.0, %v2108_v12  ;;  %2129 = vpow2.f32 %v1363_v54  ;;  %v1227_v56 = vsub.f32 0.0, %v1163_v27  ;;  %v1118_v52 = vpop.xlane.xlu1 %1117 }
 0x21f   : > { %v1116_v16 = vpop.xlane.xlu0 %1115  ;;  %v2112_v14 = vpop.eup %2111  ;;  %1637 = vst.msk [vmem:[%s2868_s6 + $0x158] sm:$0xff] %vm1593_vm0, %v2110_v34  ;;  %2131 = vrcp.f32 %v1416_v29  ;;  %v1311_v17 = vmul.f32 1.442695, %v1228_v33  ;;  %v1196_v18 = vadd.f32 %v2843_v50, %v1118_v52 }
 0x220   : > { %v1195_v21 = vadd.f32 %v2843_v50, %v1116_v16  ;;  %v2114_v22 = vpop.eup %2113  ;;  %2133 = vrcp.f32 %v1415_v15  ;;  %v1448_v23 = vadd.f32 1.0, %v2112_v14  ;;  %v1309_v24 = vmul.f32 1.442695, %v1227_v56 }
 0x221   : > { %v2116_v25 = vpop.eup %2115  ;;  %1636 = vst.msk [vmem:[%s2868_s6 + $0x150] sm:$0xff] %vm1593_vm0, %v2114_v22  ;;  %2135 = vpow2.f32 %v1361_v30  ;;  %v1260_v26 = vsub.f32 0.0, %v1196_v18 }
 0x222   : > { %v1259_v19 = vsub.f32 0.0, %v1195_v21  ;;  %v2118_v28 = vpop.eup %2117  ;;  %1603 = vst.msk [vmem:[%s2868_s6 + $0x48] sm:$0xff] %vm1593_vm0, %v2116_v25  ;;  %2137 = vrcp.f32 %v1448_v23  ;;  %v1050_v37 = vpop.xlane.xlu1 %1049 }
 0x223   : > { %v1048_v20 = vpop.xlane.xlu0 %1047  ;;  %v2120_v39 = vpop.eup %2119  ;;  %1602 = vst.msk [vmem:[%s2868_s6 + $0x40] sm:$0xff] %vm1593_vm0, %v2118_v28  ;;  %2139 = vpow2.f32 %v1311_v17  ;;  %v1375_v32 = vmul.f32 1.442695, %v1260_v26  ;;  %v1162_v31 = vadd.f32 %v2843_v50, %v1050_v37 }
 0x224   : > { %v2122_v41 = vpop.eup %2121  ;;  %v1447_v42 = vadd.f32 1.0, %v2120_v39  ;;  %2141 = vpow2.f32 %v1309_v24  ;;  %v1373_v43 = vmul.f32 1.442695, %v1259_v19  ;;  %v1161_v46 = vadd.f32 %v2843_v50, %v1048_v20 }
 0x225   : > { %v2124_v47 = vpop.eup %2123  ;;  %v1414_v36 = vadd.f32 1.0, %v2122_v41  ;;  %2143 = vpow2.f32 %v1375_v32  ;;  %v1226_v38 = vsub.f32 0.0, %v1162_v31 }
 0x226   : > { %v2126_v57 = vpop.eup %2125  ;;  %1635 = vst.msk [vmem:[%s2868_s6 + $0x148] sm:$0xff] %vm1593_vm0, %v2124_v47  ;;  %2145 = vrcp.f32 %v1447_v42  ;;  %v1225_v58 = vsub.f32 0.0, %v1161_v46  ;;  %v1114_v60 = vpop.xlane.xlu1 %1113 }
 0x227   : > { %v1112_v61 = vpop.xlane.xlu0 %1111  ;;  %v2128_v2 = vpop.eup %2127  ;;  %1634 = vst.msk [vmem:[%s2868_s6 + $0x140] sm:$0xff] %vm1593_vm0, %v2126_v57  ;;  %2147 = vrcp.f32 %v1414_v36  ;;  %v1307_v0 = vmul.f32 1.442695, %v1226_v38  ;;  %v1194_v35 = vadd.f32 %v2843_v50, %v1114_v60 }
 0x228   : > { %v1193_v3 = vadd.f32 %v2843_v50, %v1112_v61  ;;  %v2130_v55 = vpop.eup %2129  ;;  %v1413_v4 = vadd.f32 1.0, %v2128_v2  ;;  %2149 = vpow2.f32 %v1373_v43  ;;  %v1305_v49 = vmul.f32 1.442695, %v1225_v58 }
 0x229   : > { %v2132_v5 = vpop.eup %2131  ;;  %v1446_v7 = vadd.f32 1.0, %v2130_v55  ;;  %2151 = vpow2.f32 %v1307_v0  ;;  %v1258_v6 = vsub.f32 0.0, %v1194_v35 }
 0x22a   : > { %v1257_v8 = vsub.f32 0.0, %v1193_v3  ;;  %v2134_v9 = vpop.eup %2133  ;;  %1609 = vst.msk [vmem:[%s2868_s6 + $0x78] sm:$0xff] %vm1593_vm0, %v2132_v5  ;;  %2153 = vrcp.f32 %v1413_v4  ;;  %v1062_v10 = vpop.xlane.xlu1 %1061 }
 0x22b   : > { %v1060_v11 = vpop.xlane.xlu0 %1059  ;;  %v2136_v40 = vpop.eup %2135  ;;  %1608 = vst.msk [vmem:[%s2868_s6 + $0x70] sm:$0xff] %vm1593_vm0, %v2134_v9  ;;  %2155 = vrcp.f32 %v1446_v7  ;;  %v1371_v59 = vmul.f32 1.442695, %v1258_v6  ;;  %v1168_v63 = vadd.f32 %v2843_v50, %v1062_v10 }
 0x22c   : > { %v1369_v13 = vmul.f32 1.442695, %v1257_v8  ;;  %v2138_v44 = vpop.eup %2137  ;;  %v1445_v45 = vadd.f32 1.0, %v2136_v40  ;;  %2157 = vpow2.f32 %v1305_v49  ;;  %v1167_v48 = vadd.f32 %v2843_v50, %v1060_v11 }
 0x22d   : > { %v2140_v51 = vpop.eup %2139  ;;  %1641 = vst.msk [vmem:[%s2868_s6 + $0x178] sm:$0xff] %vm1593_vm0, %v2138_v44  ;;  %2159 = vpow2.f32 %v1371_v59  ;;  %v1232_v53 = vsub.f32 0.0, %v1168_v63 }
 0x22e   : > { %v2142_v54 = vpop.eup %2141  ;;  %2161 = vrcp.f32 %v1445_v45  ;;  %v1420_v62 = vadd.f32 1.0, %v2140_v51  ;;  %v1231_v1 = vsub.f32 0.0, %v1167_v48  ;;  %v1126_v27 = vpop.xlane.xlu1 %1125 }
 0x22f   : > { %v1124_v12 = vpop.xlane.xlu0 %1123  ;;  %v2144_v29 = vpop.eup %2143  ;;  %v1419_v30 = vadd.f32 1.0, %v2142_v54  ;;  %2163 = vpow2.f32 %v1369_v13  ;;  %v1319_v33 = vmul.f32 1.442695, %v1232_v53  ;;  %v1200_v34 = vadd.f32 %v2843_v50, %v1126_v27 }
 0x230   : > { %v2146_v15 = vpop.eup %2145  ;;  %2165 = vrcp.f32 %v1420_v62  ;;  %v1452_v56 = vadd.f32 1.0, %v2144_v29  ;;  %v1317_v52 = vmul.f32 1.442695, %v1231_v1  ;;  %v1199_v16 = vadd.f32 %v2843_v50, %v1124_v12 }
 0x231   : > { %v2148_v14 = vpop.eup %2147  ;;  %1640 = vst.msk [vmem:[%s2868_s6 + $0x170] sm:$0xff] %vm1593_vm0, %v2146_v15  ;;  %2167 = vrcp.f32 %v1419_v30  ;;  %v1264_v17 = vsub.f32 0.0, %v1200_v34 }
 0x232   : > { %v2150_v18 = vpop.eup %2149  ;;  %1607 = vst.msk [vmem:[%s2868_s6 + $0x68] sm:$0xff] %vm1593_vm0, %v2148_v14  ;;  %2169 = vrcp.f32 %v1452_v56  ;;  %v1263_v21 = vsub.f32 0.0, %v1199_v16  ;;  %v1058_v22 = vpop.xlane.xlu1 %1057 }
 0x233   : > { %v1056_v23 = vpop.xlane.xlu0 %1055  ;;  %v2152_v24 = vpop.eup %2151  ;;  %v1451_v25 = vadd.f32 1.0, %v2150_v18  ;;  %2171 = vpow2.f32 %v1319_v33  ;;  %v1383_v26 = vmul.f32 1.442695, %v1264_v17  ;;  %v1166_v19 = vadd.f32 %v2843_v50, %v1058_v22 }
 0x234   : > { %v2154_v28 = vpop.eup %2153  ;;  %v1418_v37 = vadd.f32 1.0, %v2152_v24  ;;  %2173 = vpow2.f32 %v1317_v52  ;;  %v1381_v20 = vmul.f32 1.442695, %v1263_v21  ;;  %v1165_v39 = vadd.f32 %v2843_v50, %v1056_v23 }
 0x235   : > { %v2156_v32 = vpop.eup %2155  ;;  %1606 = vst.msk [vmem:[%s2868_s6 + $0x60] sm:$0xff] %vm1593_vm0, %v2154_v28  ;;  %2175 = vrcp.f32 %v1451_v25  ;;  %v1230_v31 = vsub.f32 0.0, %v1166_v19 }
 0x236   : > { %v2158_v41 = vpop.eup %2157  ;;  %1639 = vst.msk [vmem:[%s2868_s6 + $0x168] sm:$0xff] %vm1593_vm0, %v2156_v32  ;;  %2177 = vrcp.f32 %v1418_v37  ;;  %v1229_v42 = vsub.f32 0.0, %v1165_v39  ;;  %v1122_v43 = vpop.xlane.xlu1 %1121 }
 0x237   : > { %v1120_v46 = vpop.xlane.xlu0 %1119  ;;  %v2160_v47 = vpop.eup %2159  ;;  %v1417_v36 = vadd.f32 1.0, %v2158_v41  ;;  %2179 = vpow2.f32 %v1383_v26  ;;  %v1315_v38 = vmul.f32 1.442695, %v1230_v31  ;;  %v1198_v57 = vadd.f32 %v2843_v50, %v1122_v43 }
 0x238   : > { %v2162_v58 = vpop.eup %2161  ;;  %v1450_v60 = vadd.f32 1.0, %v2160_v47  ;;  %2181 = vpow2.f32 %v1381_v20  ;;  %v1197_v61 = vadd.f32 %v2843_v50, %v1120_v46  ;;  %v1313_v0 = vmul.f32 1.442695, %v1229_v42 }
 0x239   : > { %v2164_v2 = vpop.eup %2163  ;;  %1638 = vst.msk [vmem:[%s2868_s6 + $0x160] sm:$0xff] %vm1593_vm0, %v2162_v58  ;;  %2183 = vrcp.f32 %v1417_v36  ;;  %v1262_v35 = vsub.f32 0.0, %v1198_v57 }
 0x23a   : > { %v2166_v3 = vpop.eup %2165  ;;  %2185 = vrcp.f32 %v1450_v60  ;;  %v1449_v55 = vadd.f32 1.0, %v2164_v2  ;;  %v1261_v4 = vsub.f32 0.0, %v1197_v61  ;;  %v1070_v49 = vpop.xlane.xlu1 %1069 }
 0x23b   : > { %v1068_v5 = vpop.xlane.xlu0 %1067  ;;  %v2168_v7 = vpop.eup %2167  ;;  %1613 = vst.msk [vmem:[%s2868_s6 + $0x98] sm:$0xff] %vm1593_vm0, %v2166_v3  ;;  %2187 = vpow2.f32 %v1315_v38  ;;  %v1379_v6 = vmul.f32 1.442695, %v1262_v35  ;;  %v1172_v8 = vadd.f32 %v2843_v50, %v1070_v49 }
 0x23c   : > { %v1171_v9 = vadd.f32 %v2843_v50, %v1068_v5  ;;  %v2170_v10 = vpop.eup %2169  ;;  %1612 = vst.msk [vmem:[%s2868_s6 + $0x90] sm:$0xff] %vm1593_vm0, %v2168_v7  ;;  %2189 = vrcp.f32 %v1449_v55  ;;  %v1377_v11 = vmul.f32 1.442695, %v1261_v4 }
 0x23d   : > { %v2172_v40 = vpop.eup %2171  ;;  %1645 = vst.msk [vmem:[%s2868_s6 + $0x198] sm:$0xff] %vm1593_vm0, %v2170_v10  ;;  %2191 = vpow2.f32 %v1313_v0  ;;  %v1236_v59 = vsub.f32 0.0, %v1172_v8 }
 0x23e   : > { %v1235_v13 = vsub.f32 0.0, %v1171_v9  ;;  %v2174_v63 = vpop.eup %2173  ;;  %v1424_v44 = vadd.f32 1.0, %v2172_v40  ;;  %2193 = vpow2.f32 %v1379_v6  ;;  %v1134_v45 = vpop.xlane.xlu1 %1133 }
 0x23f   : > { %v1132_v48 = vpop.xlane.xlu0 %1131  ;;  %v2176_v51 = vpop.eup %2175  ;;  %v1423_v53 = vadd.f32 1.0, %v2174_v63  ;;  %2195 = vpow2.f32 %v1377_v11  ;;  %v1327_v54 = vmul.f32 1.442695, %v1236_v59  ;;  %v1204_v27 = vadd.f32 %v2843_v50, %v1134_v45 }
 0x240   : > { %v1325_v62 = vmul.f32 1.442695, %v1235_v13  ;;  %v2178_v1 = vpop.eup %2177  ;;  %1644 = vst.msk [vmem:[%s2868_s6 + $0x190] sm:$0xff] %vm1593_vm0, %v2176_v51  ;;  %2197 = vrcp.f32 %v1424_v44  ;;  %v1203_v12 = vadd.f32 %v2843_v50, %v1132_v48 }
 0x241   : > { %v2180_v29 = vpop.eup %2179  ;;  %1611 = vst.msk [vmem:[%s2868_s6 + $0x88] sm:$0xff] %vm1593_vm0, %v2178_v1  ;;  %2199 = vrcp.f32 %v1423_v53  ;;  %v1268_v34 = vsub.f32 0.0, %v1204_v27 }
 0x242   : > { %v2182_v30 = vpop.eup %2181  ;;  %v1456_v33 = vadd.f32 1.0, %v2180_v29  ;;  %2201 = vpow2.f32 %v1327_v54  ;;  %v1267_v15 = vsub.f32 0.0, %v1203_v12  ;;  %v1066_v56 = vpop.xlane.xlu1 %1065 }
 0x243   : > { %v1064_v52 = vpop.xlane.xlu0 %1063  ;;  %v2184_v16 = vpop.eup %2183  ;;  %v1455_v14 = vadd.f32 1.0, %v2182_v30  ;;  %2203 = vpow2.f32 %v1325_v62  ;;  %v1170_v17 = vadd.f32 %v2843_v50, %v1066_v56  ;;  %v1391_v22 = vmul.f32 1.442695, %v1268_v34 }
 0x244   : > { %v1169_v18 = vadd.f32 %v2843_v50, %v1064_v52  ;;  %v2186_v21 = vpop.eup %2185  ;;  %1610 = vst.msk [vmem:[%s2868_s6 + $0x80] sm:$0xff] %vm1593_vm0, %v2184_v16  ;;  %2205 = vrcp.f32 %v1456_v33  ;;  %v1389_v23 = vmul.f32 1.442695, %v1267_v15 }
 0x245   : > { %v2188_v24 = vpop.eup %2187  ;;  %1643 = vst.msk [vmem:[%s2868_s6 + $0x188] sm:$0xff] %vm1593_vm0, %v2186_v21  ;;  %2207 = vrcp.f32 %v1455_v14  ;;  %v1234_v25 = vsub.f32 0.0, %v1170_v17 }
 0x246   : > { %v1233_v26 = vsub.f32 0.0, %v1169_v18  ;;  %v2190_v19 = vpop.eup %2189  ;;  %v1422_v28 = vadd.f32 1.0, %v2188_v24  ;;  %2209 = vpow2.f32 %v1391_v22  ;;  %v1130_v37 = vpop.xlane.xlu1 %1129 }
 0x247   : > { %v1128_v20 = vpop.xlane.xlu0 %1127  ;;  %v2192_v39 = vpop.eup %2191  ;;  %1642 = vst.msk [vmem:[%s2868_s6 + $0x180] sm:$0xff] %vm1593_vm0, %v2190_v19  ;;  %2211 = vpow2.f32 %v1389_v23  ;;  %v1323_v32 = vmul.f32 1.442695, %v1234_v25  ;;  %v1202_v31 = vadd.f32 %v2843_v50, %v1130_v37 }
 0x248   : > { %v2194_v41 = vpop.eup %2193  ;;  %2213 = vrcp.f32 %v1422_v28  ;;  %v1421_v42 = vadd.f32 1.0, %v2192_v39  ;;  %v1201_v43 = vadd.f32 %v2843_v50, %v1128_v20  ;;  %v1321_v36 = vmul.f32 1.442695, %v1233_v26 }
 0x249   : > { %v2196_v46 = vpop.eup %2195  ;;  %v1454_v47 = vadd.f32 1.0, %v2194_v41  ;;  %2215 = vpow2.f32 %v1323_v32  ;;  %v1266_v38 = vsub.f32 0.0, %v1202_v31 }
 0x24a   : > { %v2198_v57 = vpop.eup %2197  ;;  %2217 = vrcp.f32 %v1421_v42  ;;  %v1453_v58 = vadd.f32 1.0, %v2196_v46  ;;  %v1265_v60 = vsub.f32 0.0, %v1201_v43  ;;  %v1078_v61 = vpop.xlane.xlu1 %1077 }
 0x24b   : > { %v1076_v2 = vpop.xlane.xlu0 %1075  ;;  %v2200_v0 = vpop.eup %2199  ;;  %1617 = vst.msk [vmem:[%s2868_s6 + $0xb8] sm:$0xff] %vm1593_vm0, %v2198_v57  ;;  %2219 = vrcp.f32 %v1454_v47  ;;  %v1387_v35 = vmul.f32 1.442695, %v1266_v38  ;;  %v1176_v3 = vadd.f32 %v2843_v50, %v1078_v61 }
 0x24c   : > { %v1175_v55 = vadd.f32 %v2843_v50, %v1076_v2  ;;  %v2202_v4 = vpop.eup %2201  ;;  %1616 = vst.msk [vmem:[%s2868_s6 + $0xb0] sm:$0xff] %vm1593_vm0, %v2200_v0  ;;  %2221 = vrcp.f32 %v1453_v58  ;;  %v1385_v49 = vmul.f32 1.442695, %v1265_v60 }
 0x24d   : > { %v2204_v5 = vpop.eup %2203  ;;  %v1428_v7 = vadd.f32 1.0, %v2202_v4  ;;  %2223 = vpow2.f32 %v1321_v36  ;;  %v1240_v6 = vsub.f32 0.0, %v1176_v3 }
 0x24e   : > { %v1239_v8 = vsub.f32 0.0, %v1175_v55  ;;  %v2206_v9 = vpop.eup %2205  ;;  %v1427_v10 = vadd.f32 1.0, %v2204_v5  ;;  %2225 = vpow2.f32 %v1387_v35  ;;  %v1074_v11 = vpop.xlane.xlu1 %1073 }
 0x24f   : > { %v1072_v40 = vpop.xlane.xlu0 %1071  ;;  %v2208_v59 = vpop.eup %2207  ;;  %1649 = vst.msk [vmem:[%s2868_s6 + $0x1b8] sm:$0xff] %vm1593_vm0, %v2206_v9  ;;  %2227 = vrcp.f32 %v1428_v7  ;;  %v1335_v13 = vmul.f32 1.442695, %v1240_v6  ;;  %v1174_v63 = vadd.f32 %v2843_v50, %v1074_v11 }
 0x250   : > { %v2210_v44 = vpop.eup %2209  ;;  %1648 = vst.msk [vmem:[%s2868_s6 + $0x1b0] sm:$0xff] %vm1593_vm0, %v2208_v59  ;;  %2229 = vrcp.f32 %v1427_v10  ;;  %v1173_v45 = vadd.f32 %v2843_v50, %v1072_v40  ;;  %v1333_v53 = vmul.f32 1.442695, %v1239_v8 }
 0x251   : > { %v2212_v48 = vpop.eup %2211  ;;  %v1460_v51 = vadd.f32 1.0, %v2210_v44  ;;  %2231 = vpow2.f32 %v1385_v49  ;;  %v1238_v54 = vsub.f32 0.0, %v1174_v63 }
 0x252   : > { %v2214_v62 = vpop.eup %2213  ;;  %v1459_v1 = vadd.f32 1.0, %v2212_v48  ;;  %2233 = vpow2.f32 %v1335_v13  ;;  %v1237_v27 = vsub.f32 0.0, %v1173_v45  ;;  %v1138_v12 = vpop.xlane.xlu1 %1137 }
 0x253   : > { %v1136_v29 = vpop.xlane.xlu0 %1135  ;;  %v2216_v30 = vpop.eup %2215  ;;  %1615 = vst.msk [vmem:[%s2868_s6 + $0xa8] sm:$0xff] %vm1593_vm0, %v2214_v62  ;;  %2235 = vrcp.f32 %v1460_v51  ;;  %v1331_v33 = vmul.f32 1.442695, %v1238_v54  ;;  %v1206_v34 = vadd.f32 %v2843_v50, %v1138_v12 }
 0x254   : > { %v1205_v15 = vadd.f32 %v2843_v50, %v1136_v29  ;;  %v2218_v56 = vpop.eup %2217  ;;  %2237 = vrcp.f32 %v1459_v1  ;;  %v1426_v52 = vadd.f32 1.0, %v2216_v30  ;;  %v1329_v16 = vmul.f32 1.442695, %v1237_v27 }
 0x255   : > { %v2220_v14 = vpop.eup %2219  ;;  %1614 = vst.msk [vmem:[%s2868_s6 + $0xa0] sm:$0xff] %vm1593_vm0, %v2218_v56  ;;  %2239 = vpow2.f32 %v1333_v53  ;;  %v1270_v17 = vsub.f32 0.0, %v1206_v34 }
 0x256   : > { %v1269_v18 = vsub.f32 0.0, %v1205_v15  ;;  %v2222_v21 = vpop.eup %2221  ;;  %1647 = vst.msk [vmem:[%s2868_s6 + $0x1a8] sm:$0xff] %vm1593_vm0, %v2220_v14  ;;  %2241 = vrcp.f32 %v1426_v52  ;;  %v1142_v22 = vpop.xlane.xlu1 %1141 }
 0x257   : > { %v1140_v23 = vpop.xlane.xlu0 %1139  ;;  %v2224_v24 = vpop.eup %2223  ;;  %1646 = vst.msk [vmem:[%s2868_s6 + $0x1a0] sm:$0xff] %vm1593_vm0, %v2222_v21  ;;  %2243 = vpow2.f32 %v1331_v33  ;;  %v1395_v25 = vmul.f32 1.442695, %v1270_v17  ;;  %v1208_v26 = vadd.f32 %v2843_v50, %v1142_v22 }
 0x258   : > { %v2226_v19 = vpop.eup %2225  ;;  %v1425_v28 = vadd.f32 1.0, %v2224_v24  ;;  %2245 = vpow2.f32 %v1329_v16  ;;  %v1393_v37 = vmul.f32 1.442695, %v1269_v18  ;;  %v1207_v20 = vadd.f32 %v2843_v50, %v1140_v23 }
 0x259   : > { %v2228_v39 = vpop.eup %2227  ;;  %v1458_v32 = vadd.f32 1.0, %v2226_v19  ;;  %2247 = vpow2.f32 %v1395_v25  ;;  %v1272_v31 = vsub.f32 0.0, %v1208_v26 }
 0x25a   : > { %v2230_v41 = vpop.eup %2229  ;;  %1621 = vst.msk [vmem:[%s2868_s6 + $0xd8] sm:$0xff] %vm1593_vm0, %v2228_v39  ;;  %2249 = vrcp.f32 %v1425_v28  ;;  %v1271_v42 = vsub.f32 0.0, %v1207_v20 }
 0x25b   : > { %v2232_v43 = vpop.eup %2231  ;;  %1620 = vst.msk [vmem:[%s2868_s6 + $0xd0] sm:$0xff] %vm1593_vm0, %v2230_v41  ;;  %2251 = vrcp.f32 %v1458_v32  ;;  %v1399_v46 = vmul.f32 1.442695, %v1272_v31 }
 0x25c   : > { %v2234_v47 = vpop.eup %2233  ;;  %v1457_v36 = vadd.f32 1.0, %v2232_v43  ;;  %2253 = vpow2.f32 %v1393_v37  ;;  %v1397_v50 = vmul.f32 1.442695, %v1271_v42 }
 0x25d   : > { %v2236_v38 = vpop.eup %2235  ;;  %v1432_v57 = vadd.f32 1.0, %v2234_v47  ;;  %2255 = vpow2.f32 %v1399_v46 }
 0x25e   : > { %v2238_v58 = vpop.eup %2237  ;;  %1653 = vst.msk [vmem:[%s2868_s6 + $0x1d8] sm:$0xff] %vm1593_vm0, %v2236_v38  ;;  %2257 = vrcp.f32 %v1457_v36 }
 0x25f   : > { %v2240_v60 = vpop.eup %2239  ;;  %1652 = vst.msk [vmem:[%s2868_s6 + $0x1d0] sm:$0xff] %vm1593_vm0, %v2238_v58  ;;  %2259 = vrcp.f32 %v1432_v57 }
 0x260   : > { %v2242_v61 = vpop.eup %2241  ;;  %v1431_v2 = vadd.f32 1.0, %v2240_v60  ;;  %2261 = vpow2.f32 %v1397_v50 }
 0x261   : > { %v2244_v0 = vpop.eup %2243  ;;  %1619 = vst.msk [vmem:[%s2868_s6 + $0xc8] sm:$0xff] %vm1593_vm0, %v2242_v61 }
 0x262   : > { %v2246_v35 = vpop.eup %2245  ;;  %2263 = vrcp.f32 %v1431_v2  ;;  %v1430_v3 = vadd.f32 1.0, %v2244_v0 }
 0x263   : > { %v2248_v55 = vpop.eup %2247  ;;  %v1429_v4 = vadd.f32 1.0, %v2246_v35 }
 0x264   : > { %v2250_v49 = vpop.eup %2249  ;;  %2265 = vrcp.f32 %v1430_v3  ;;  %v1462_v5 = vadd.f32 1.0, %v2248_v55 }
 0x265   : > { %v2252_v7 = vpop.eup %2251  ;;  %1618 = vst.msk [vmem:[%s2868_s6 + $0xc0] sm:$0xff] %vm1593_vm0, %v2250_v49  ;;  %2267 = vrcp.f32 %v1429_v4 }
 0x266   : > { %v2254_v6 = vpop.eup %2253  ;;  %1651 = vst.msk [vmem:[%s2868_s6 + $0x1c8] sm:$0xff] %vm1593_vm0, %v2252_v7  ;;  %2269 = vrcp.f32 %v1462_v5 }
 0x267   : > { %v2256_v8 = vpop.eup %2255  ;;  %v1461_v9 = vadd.f32 1.0, %v2254_v6 }
 0x268   : > { %v2258_v10 = vpop.eup %2257  ;;  %v1464_v11 = vadd.f32 1.0, %v2256_v8 }
 0x269   : > { %v2260_v40 = vpop.eup %2259  ;;  %1650 = vst.msk [vmem:[%s2868_s6 + $0x1c0] sm:$0xff] %vm1593_vm0, %v2258_v10  ;;  %2271 = vrcp.f32 %v1461_v9 }
 0x26a   : > { %v2262_v59 = vpop.eup %2261  ;;  %1625 = vst.msk [vmem:[%s2868_s6 + $0xf8] sm:$0xff] %vm1593_vm0, %v2260_v40  ;;  %2273 = vrcp.f32 %v1464_v11 }
 0x26b   : > { %v1463_v13 = vadd.f32 1.0, %v2262_v59 }
 0x26c   : > { %v2264_v63 = vpop.eup %2263 }
 0x26d   : > { %1624 = vst.msk [vmem:[%s2868_s6 + $0xf0] sm:$0xff] %vm1593_vm0, %v2264_v63  ;;  %2275 = vrcp.f32 %v1463_v13 }
 0x26e   : > { %v2266_v44 = vpop.eup %2265 }
 0x26f   : > { %v2268_v45 = vpop.eup %2267  ;;  %1623 = vst.msk [vmem:[%s2868_s6 + $0xe8] sm:$0xff] %vm1593_vm0, %v2266_v44 }
 0x270   : > { %v2270_v48 = vpop.eup %2269  ;;  %1622 = vst.msk [vmem:[%s2868_s6 + $0xe0] sm:$0xff] %vm1593_vm0, %v2268_v45 }
 0x271   : > { %1655 = vst.msk [vmem:[%s2868_s6 + $0x1e8] sm:$0xff] %vm1593_vm0, %v2270_v48 }
 0x273   : > { %v2272_v51 = vpop.eup %2271 }
 0x274   : > { %v2274_v53 = vpop.eup %2273  ;;  %1654 = vst.msk [vmem:[%s2868_s6 + $0x1e0] sm:$0xff] %vm1593_vm0, %v2272_v51 }
 0x275   : > { %1657 = vst.msk [vmem:[%s2868_s6 + $0x1f8] sm:$0xff] %vm1593_vm0, %v2274_v53 }
 0x277   : > { %v2276_v54 = vpop.eup %2275 }
 0x278   : > { %1656 = vst.msk [vmem:[%s2868_s6 + $0x1f0] sm:$0xff] %vm1593_vm0, %v2276_v54 }
 0x279 PF: > { %s3079_s12 = smov %s2488_s20  ;;  %p17_p6 = scmp.ge.s32.totalorder %s2459_s30, 4  }
 0x27a   : > { %s3080_s20 = smov %s2365_s21  ;;  %s3081_s21 = smov %s2369_s22 }
 0x27b   : > { %s3082_s22 = smov %s3079_s12  ;;  %s3083_s23 = smov %s2459_s30 }
 0x27c   :  { %19 = sbr.rel (!%p17_p6) target bundleno = 6 (0x6), region = 84 }
 0x283   :  { %1680 = vsyncpa [#allocation4], 1 }
 0x284   :  { %1682 = vsyncpa [#allocation4 + $0x1], 1 }
 0x285   :  { %1683 = vsyncpa [#allocation6], 1 }

</bundles_post_ra>
